<compile_context>
chip_gen: v7x
topology: tpu7x:2x2x1
jax: 0.10.0
libtpu: 0.0.40
codegen_flags: <defaults>
</compile_context>

<pallas_src>
import jax
import jax.numpy as jnp
from jax.experimental import pallas as pl
from jax.experimental.pallas import tpu as pltpu

# Logical (PyTorch) dims.
IN_DIM, H1, H2, H3, NUM_CLASSES = 28 * 28, 300, 300, 200, 10
# Lane-aligned padded dims (input K left at 784 -- full-dim block is legal).
H1_PAD, H2_PAD, H3_PAD, OUT_PAD = 384, 384, 256, 128
NEG_BIG = -1.0e30  # finite "minus infinity" for padded class logits


def _mlp_kernel(x_ref, w1_ref, b1_ref, w2_ref, b2_ref,
                w3_ref, b3_ref, w4_ref, b4_ref, out_ref):
    # Cast activations to bf16 in-kernel (fold of the old wrapper pad/cast).
    x = x_ref[...].astype(jnp.bfloat16)
    # fc1 + relu : bf16 operands -> f32 MXU accumulate -> bf16 bias/relu
    h = jnp.dot(x, w1_ref[...], preferred_element_type=jnp.float32)
    h = jnp.maximum(h.astype(jnp.bfloat16) + b1_ref[...], 0)
    # fc2 + relu
    h = jnp.dot(h, w2_ref[...], preferred_element_type=jnp.float32)
    h = jnp.maximum(h.astype(jnp.bfloat16) + b2_ref[...], 0)
    # fc3 + relu
    h = jnp.dot(h, w3_ref[...], preferred_element_type=jnp.float32)
    h = jnp.maximum(h.astype(jnp.bfloat16) + b3_ref[...], 0)
    # fc4 (no relu); f32 bias + f32 log_softmax over the lane-dense 128 logits.
    logits = jnp.dot(h, w4_ref[...], preferred_element_type=jnp.float32)
    logits = logits + b4_ref[...]
    m = jnp.max(logits, axis=-1, keepdims=True)
    shifted = logits - m
    lse = jnp.log(jnp.sum(jnp.exp(shifted), axis=-1, keepdims=True))
    out_ref[...] = shifted - lse


def _round_up(n, m):
    return ((n + m - 1) // m) * m


def mlp_forward(x, params, *, batch_tile=256):
    """x: [B, 784] float32. params: padded bf16 weights (see prepare_params)."""
    B = x.shape[0]
    # Batch tile: multiple of 16 (bf16 sublane packing of intermediates),
    # capped at batch_tile, and kept to >= 2 grid steps when possible so both
    # v7x TensorCores are used via the "parallel" grid axis.
    tb = min(batch_tile, _round_up(B, 16))
    if pl.cdiv(B, tb) < 2 and B > 16:
        tb = _round_up(pl.cdiv(B, 2), 16)
    grid = (pl.cdiv(B, tb),)

    def resident(shape):
        # Constant block index -> weights/biases stay VMEM-resident.
        return pl.BlockSpec(shape, lambda i: (0, 0))

    w1, b1 = params["w1"], params["b1"]
    w2, b2 = params["w2"], params["b2"]
    w3, b3 = params["w3"], params["b3"]
    w4, b4 = params["w4"], params["b4"]

    out_padded = pl.pallas_call(
        _mlp_kernel,
        out_shape=jax.ShapeDtypeStruct((B, OUT_PAD), jnp.float32),
        grid=grid,
        in_specs=[
            pl.BlockSpec((tb, IN_DIM), lambda i: (i, 0)),  # raw f32 x
            resident(w1.shape), resident(b1.shape),
            resident(w2.shape), resident(b2.shape),
            resident(w3.shape), resident(b3.shape),
            resident(w4.shape), resident(b4.shape),
        ],
        out_specs=pl.BlockSpec((tb, OUT_PAD), lambda i: (i, 0)),
        compiler_params=pltpu.CompilerParams(
            dimension_semantics=("parallel",)),
    )(x, w1, b1, w2, b2, w3, b3, w4, b4)
    # Drop the padded (inert) class columns; tiny slice, negligible cost.
    return out_padded[:, :NUM_CLASSES]


def init_params(key):
    """PyTorch nn.Linear default init (uniform +-1/sqrt(fan_in)); logical shapes, f32."""
    dims = [(IN_DIM, H1), (H1, H2), (H2, H3), (H3, NUM_CLASSES)]
    params = {}
    keys = jax.random.split(key, 2 * len(dims))
    for i, (fan_in, fan_out) in enumerate(dims):
        bound = 1.0 / jnp.sqrt(jnp.float32(fan_in))
        params[f"w{i + 1}"] = jax.random.uniform(
            keys[2 * i], (fan_in, fan_out), minval=-bound, maxval=bound,
            dtype=jnp.float32)
        params[f"b{i + 1}"] = jax.random.uniform(
            keys[2 * i + 1], (1, fan_out), minval=-bound, maxval=bound,
            dtype=jnp.float32)
    return params


def _pad2(a, target_shape, fill=0.0):
    pads = tuple((0, t - s) for s, t in zip(a.shape, target_shape))
    return jnp.pad(a, pads, constant_values=fill)


def prepare_params(raw):
    """Zero-pad to lane-aligned shapes.

    Weights + hidden biases -> bf16. Final bias stays f32 and its padded class
    entries get a large finite negative so padded logits vanish from the
    softmax denominator (ReLU(0)=0 keeps padded hidden units inert).
    """
    out = {
        "w1": _pad2(raw["w1"], (IN_DIM, H1_PAD)).astype(jnp.bfloat16),
        "b1": _pad2(raw["b1"], (1, H1_PAD)).astype(jnp.bfloat16),
        "w2": _pad2(raw["w2"], (H1_PAD, H2_PAD)).astype(jnp.bfloat16),
        "b2": _pad2(raw["b2"], (1, H2_PAD)).astype(jnp.bfloat16),
        "w3": _pad2(raw["w3"], (H2_PAD, H3_PAD)).astype(jnp.bfloat16),
        "b3": _pad2(raw["b3"], (1, H3_PAD)).astype(jnp.bfloat16),
        "w4": _pad2(raw["w4"], (H3_PAD, OUT_PAD)).astype(jnp.bfloat16),
        "b4": _pad2(raw["b4"], (1, OUT_PAD), fill=NEG_BIG).astype(jnp.float32),
    }
    return out


def reference_forward(x, params):
    """Pure-JAX reference matching the kernel's numerics (bf16 ops, f32 accum)."""
    h = x.astype(jnp.bfloat16)

    def hidden(h, w, b):
        acc = jnp.dot(h, w, preferred_element_type=jnp.float32)
        return jnp.maximum(acc.astype(jnp.bfloat16) + b, 0)

    h = hidden(h, params["w1"], params["b1"])
    h = hidden(h, params["w2"], params["b2"])
    h = hidden(h, params["w3"], params["b3"])
    logits = jnp.dot(h, params["w4"],
                     preferred_element_type=jnp.float32) + params["b4"]
    return jax.nn.log_softmax(logits, axis=-1)[:, :NUM_CLASSES]


def reference_forward_f32(x, raw):
    """Full-f32 reference of the original PyTorch semantics (loose sanity check)."""
    h = jnp.maximum(x @ raw["w1"] + raw["b1"], 0.0)
    h = jnp.maximum(h @ raw["w2"] + raw["b2"], 0.0)
    h = jnp.maximum(h @ raw["w3"] + raw["b3"], 0.0)
    logits = h @ raw["w4"] + raw["b4"]
    return jax.nn.log_softmax(logits, axis=-1)


if __name__ == "__main__":
    key = jax.random.PRNGKey(0)
    pkey, xkey = jax.random.split(key)
    raw_params = init_params(pkey)
    params = prepare_params(raw_params)

    B = 32  # small deterministic example batch; tb=16 -> grid=(2,)
    x = jax.random.normal(xkey, (B, IN_DIM), dtype=jnp.float32)

    out = jax.block_until_ready(mlp_forward(x, params))
    assert out.shape == (B, NUM_CLASSES)

    ref = reference_forward(x, params)
    assert jnp.allclose(out, ref, atol=2e-3, rtol=2e-3), \
        "mismatch vs bf16-matched reference"

    ref32 = reference_forward_f32(x, raw_params)
    assert jnp.allclose(out, ref32, atol=1.5e-1, rtol=1.5e-1), \
        "mismatch vs f32 reference"

    print("KERNEL_OK")
</pallas_src>

<mosaic_0001>
module attributes {stable_mosaic.version = 11 : i64} {
  func.func @_mlp_kernel(%arg0: i32, %arg1: memref<16x784xf32, #tpu.memory_space<vmem>>, %arg2: memref<784x384xbf16, #tpu.memory_space<vmem>>, %arg3: memref<1x384xbf16, #tpu.memory_space<vmem>>, %arg4: memref<384x384xbf16, #tpu.memory_space<vmem>>, %arg5: memref<1x384xbf16, #tpu.memory_space<vmem>>, %arg6: memref<384x256xbf16, #tpu.memory_space<vmem>>, %arg7: memref<1x256xbf16, #tpu.memory_space<vmem>>, %arg8: memref<256x128xbf16, #tpu.memory_space<vmem>>, %arg9: memref<1x128xf32, #tpu.memory_space<vmem>>, %arg10: memref<16x128xf32, #tpu.memory_space<vmem>>) attributes {dimension_semantics = [#tpu.dimension_semantics<parallel>], iteration_bounds = array<i64: 2>, scalar_prefetch = 0 : i64, scratch_operands = 0 : i64, tpu.core_type = #tpu.core_type<tc>, window_params = [{transform_indices = @transform_0, window_bounds = array<i64: 16, 784>}, {pipeline_mode = #tpu.pipeline_mode<synchronous>, transform_indices = @transform_1, window_bounds = array<i64: 784, 384>}, {pipeline_mode = #tpu.pipeline_mode<synchronous>, transform_indices = @transform_2, window_bounds = array<i64: 1, 384>}, {pipeline_mode = #tpu.pipeline_mode<synchronous>, transform_indices = @transform_3, window_bounds = array<i64: 384, 384>}, {pipeline_mode = #tpu.pipeline_mode<synchronous>, transform_indices = @transform_4, window_bounds = array<i64: 1, 384>}, {pipeline_mode = #tpu.pipeline_mode<synchronous>, transform_indices = @transform_5, window_bounds = array<i64: 384, 256>}, {pipeline_mode = #tpu.pipeline_mode<synchronous>, transform_indices = @transform_6, window_bounds = array<i64: 1, 256>}, {pipeline_mode = #tpu.pipeline_mode<synchronous>, transform_indices = @transform_7, window_bounds = array<i64: 256, 128>}, {pipeline_mode = #tpu.pipeline_mode<synchronous>, transform_indices = @transform_8, window_bounds = array<i64: 1, 128>}, {transform_indices = @transform_9, window_bounds = array<i64: 16, 128>}]} {
    %c0 = arith.constant 0 : index
    %c0_0 = arith.constant 0 : index
    %0 = vector.load %arg1[%c0, %c0_0] : memref<16x784xf32, #tpu.memory_space<vmem>>, vector<16x784xf32>
    %1 = arith.truncf %0 : vector<16x784xf32> to vector<16x784xbf16>
    %c0_1 = arith.constant 0 : index
    %c0_2 = arith.constant 0 : index
    %2 = vector.load %arg2[%c0_1, %c0_2] : memref<784x384xbf16, #tpu.memory_space<vmem>>, vector<784x384xbf16>
    %cst = arith.constant dense<0.000000e+00> : vector<16x384xf32>
    %3 = tpu.matmul %1, %2, %cst {dimension_numbers = #tpu.dot_dimension_numbers<[1], [0], [0], [1], [0, 0, 1, 1], [], []>} : vector<16x784xbf16>, vector<784x384xbf16>, vector<16x384xf32> -> vector<16x384xf32>
    %4 = arith.truncf %3 : vector<16x384xf32> to vector<16x384xbf16>
    %c0_3 = arith.constant 0 : index
    %c0_4 = arith.constant 0 : index
    %5 = vector.load %arg3[%c0_3, %c0_4] : memref<1x384xbf16, #tpu.memory_space<vmem>>, vector<1x384xbf16>
    %6 = vector.broadcast %5 : vector<1x384xbf16> to vector<16x384xbf16>
    %7 = arith.addf %4, %6 : vector<16x384xbf16>
    %cst_5 = arith.constant 0.000000e+00 : bf16
    %8 = vector.broadcast %cst_5 : bf16 to vector<16x384xbf16>
    %9 = arith.maximumf %7, %8 : vector<16x384xbf16>
    %c0_6 = arith.constant 0 : index
    %c0_7 = arith.constant 0 : index
    %10 = vector.load %arg4[%c0_6, %c0_7] : memref<384x384xbf16, #tpu.memory_space<vmem>>, vector<384x384xbf16>
    %cst_8 = arith.constant dense<0.000000e+00> : vector<16x384xf32>
    %11 = tpu.matmul %9, %10, %cst_8 {dimension_numbers = #tpu.dot_dimension_numbers<[1], [0], [0], [1], [0, 0, 1, 1], [], []>} : vector<16x384xbf16>, vector<384x384xbf16>, vector<16x384xf32> -> vector<16x384xf32>
    %12 = arith.truncf %11 : vector<16x384xf32> to vector<16x384xbf16>
    %c0_9 = arith.constant 0 : index
    %c0_10 = arith.constant 0 : index
    %13 = vector.load %arg5[%c0_9, %c0_10] : memref<1x384xbf16, #tpu.memory_space<vmem>>, vector<1x384xbf16>
    %14 = vector.broadcast %13 : vector<1x384xbf16> to vector<16x384xbf16>
    %15 = arith.addf %12, %14 : vector<16x384xbf16>
    %cst_11 = arith.constant 0.000000e+00 : bf16
    %16 = vector.broadcast %cst_11 : bf16 to vector<16x384xbf16>
    %17 = arith.maximumf %15, %16 : vector<16x384xbf16>
    %c0_12 = arith.constant 0 : index
    %c0_13 = arith.constant 0 : index
    %18 = vector.load %arg6[%c0_12, %c0_13] : memref<384x256xbf16, #tpu.memory_space<vmem>>, vector<384x256xbf16>
    %cst_14 = arith.constant dense<0.000000e+00> : vector<16x256xf32>
    %19 = tpu.matmul %17, %18, %cst_14 {dimension_numbers = #tpu.dot_dimension_numbers<[1], [0], [0], [1], [0, 0, 1, 1], [], []>} : vector<16x384xbf16>, vector<384x256xbf16>, vector<16x256xf32> -> vector<16x256xf32>
    %20 = arith.truncf %19 : vector<16x256xf32> to vector<16x256xbf16>
    %c0_15 = arith.constant 0 : index
    %c0_16 = arith.constant 0 : index
    %21 = vector.load %arg7[%c0_15, %c0_16] : memref<1x256xbf16, #tpu.memory_space<vmem>>, vector<1x256xbf16>
    %22 = vector.broadcast %21 : vector<1x256xbf16> to vector<16x256xbf16>
    %23 = arith.addf %20, %22 : vector<16x256xbf16>
    %cst_17 = arith.constant 0.000000e+00 : bf16
    %24 = vector.broadcast %cst_17 : bf16 to vector<16x256xbf16>
    %25 = arith.maximumf %23, %24 : vector<16x256xbf16>
    %c0_18 = arith.constant 0 : index
    %c0_19 = arith.constant 0 : index
    %26 = vector.load %arg8[%c0_18, %c0_19] : memref<256x128xbf16, #tpu.memory_space<vmem>>, vector<256x128xbf16>
    %cst_20 = arith.constant dense<0.000000e+00> : vector<16x128xf32>
    %27 = tpu.matmul %25, %26, %cst_20 {dimension_numbers = #tpu.dot_dimension_numbers<[1], [0], [0], [1], [0, 0, 1, 1], [], []>} : vector<16x256xbf16>, vector<256x128xbf16>, vector<16x128xf32> -> vector<16x128xf32>
    %c0_21 = arith.constant 0 : index
    %c0_22 = arith.constant 0 : index
    %28 = vector.load %arg9[%c0_21, %c0_22] : memref<1x128xf32, #tpu.memory_space<vmem>>, vector<1x128xf32>
    %29 = vector.broadcast %28 : vector<1x128xf32> to vector<16x128xf32>
    %30 = arith.addf %27, %29 : vector<16x128xf32>
    %cst_23 = arith.constant dense<0xFF800000> : vector<16xf32>
    %31 = vector.multi_reduction <maximumf>, %30, %cst_23 [1] : vector<16x128xf32> to vector<16xf32>
    %32 = vector.shape_cast %31 : vector<16xf32> to vector<16x1xf32>
    %33 = vector.broadcast %32 : vector<16x1xf32> to vector<16x128xf32>
    %34 = arith.subf %30, %33 : vector<16x128xf32>
    %35 = math.exp %34 : vector<16x128xf32>
    %cst_24 = arith.constant dense<0.000000e+00> : vector<16xf32>
    %36 = vector.multi_reduction <add>, %35, %cst_24 [1] : vector<16x128xf32> to vector<16xf32>
    %37 = vector.shape_cast %36 : vector<16xf32> to vector<16x1xf32>
    %38 = math.log %37 : vector<16x1xf32>
    %39 = vector.broadcast %38 : vector<16x1xf32> to vector<16x128xf32>
    %40 = arith.subf %34, %39 : vector<16x128xf32>
    %c0_25 = arith.constant 0 : index
    %c0_26 = arith.constant 0 : index
    %41 = vector.load %arg10[%c0_25, %c0_26] : memref<16x128xf32, #tpu.memory_space<vmem>>, vector<16x128xf32>
    tpu.vector_store %arg10[%c0_25, %c0_26], %40 {strides = array<i32>} : memref<16x128xf32, #tpu.memory_space<vmem>>, vector<16x128xf32>,
    return
  }
  func.func @transform_0(%arg0: i32) -> (i32, i32) {
    %c0_i32 = arith.constant 0 : i32
    %c0_i32_0 = arith.constant 0 : i32
    return %arg0, %c0_i32 : i32, i32
  }
  func.func @transform_1(%arg0: i32) -> (i32, i32) {
    %c0_i32 = arith.constant 0 : i32
    %c0_i32_0 = arith.constant 0 : i32
    %c0_i32_1 = arith.constant 0 : i32
    return %c0_i32, %c0_i32_0 : i32, i32
  }
  func.func @transform_2(%arg0: i32) -> (i32, i32) {
    %c0_i32 = arith.constant 0 : i32
    %c0_i32_0 = arith.constant 0 : i32
    %c0_i32_1 = arith.constant 0 : i32
    return %c0_i32, %c0_i32_0 : i32, i32
  }
  func.func @transform_3(%arg0: i32) -> (i32, i32) {
    %c0_i32 = arith.constant 0 : i32
    %c0_i32_0 = arith.constant 0 : i32
    %c0_i32_1 = arith.constant 0 : i32
    return %c0_i32, %c0_i32_0 : i32, i32
  }
  func.func @transform_4(%arg0: i32) -> (i32, i32) {
    %c0_i32 = arith.constant 0 : i32
    %c0_i32_0 = arith.constant 0 : i32
    %c0_i32_1 = arith.constant 0 : i32
    return %c0_i32, %c0_i32_0 : i32, i32
  }
  func.func @transform_5(%arg0: i32) -> (i32, i32) {
    %c0_i32 = arith.constant 0 : i32
    %c0_i32_0 = arith.constant 0 : i32
    %c0_i32_1 = arith.constant 0 : i32
    return %c0_i32, %c0_i32_0 : i32, i32
  }
  func.func @transform_6(%arg0: i32) -> (i32, i32) {
    %c0_i32 = arith.constant 0 : i32
    %c0_i32_0 = arith.constant 0 : i32
    %c0_i32_1 = arith.constant 0 : i32
    return %c0_i32, %c0_i32_0 : i32, i32
  }
  func.func @transform_7(%arg0: i32) -> (i32, i32) {
    %c0_i32 = arith.constant 0 : i32
    %c0_i32_0 = arith.constant 0 : i32
    %c0_i32_1 = arith.constant 0 : i32
    return %c0_i32, %c0_i32_0 : i32, i32
  }
  func.func @transform_8(%arg0: i32) -> (i32, i32) {
    %c0_i32 = arith.constant 0 : i32
    %c0_i32_0 = arith.constant 0 : i32
    %c0_i32_1 = arith.constant 0 : i32
    return %c0_i32, %c0_i32_0 : i32, i32
  }
  func.func @transform_9(%arg0: i32) -> (i32, i32) {
    %c0_i32 = arith.constant 0 : i32
    %c0_i32_0 = arith.constant 0 : i32
    return %arg0, %c0_i32 : i32, i32
  }
}

</mosaic_0001>

<bundles_post_ra>
// kernel: tpu_custom_call.1
= control target key start
LH: loop header
LB: loop body
LE: loop exit
PB: predicated region body
PF: predicated region fallthrough
CT: control target
= control target key end

     0   :  { %s4906_s0 = inlined_call_operand.hbm [shape: f32[32,784], index: 0, kind: input, shape index: {}]   ;;  %s4907_s1 = inlined_call_operand.hbm [shape: bf16[784,384], index: 1, kind: input, shape index: {}]   ;;  %s4908_s2 = inlined_call_operand.vmem [shape: bf16[1,384], index: 2, kind: input, shape index: {}]   ;;  %s4909_s3 = inlined_call_operand.hbm [shape: bf16[384,384], index: 3, kind: input, shape index: {}]   ;;  %s4910_s4 = inlined_call_operand.vmem [shape: bf16[1,384], index: 4, kind: input, shape index: {}]   ;;  %s4911_s5 = inlined_call_operand.hbm [shape: bf16[384,256], index: 5, kind: input, shape index: {}]   ;;  %s4912_s6 = inlined_call_operand.vmem [shape: bf16[1,256], index: 6, kind: input, shape index: {}]   ;;  %s4913_s7 = inlined_call_operand.hbm [shape: bf16[256,128], index: 7, kind: input, shape index: {}]   ;;  %s4914_s8 = inlined_call_operand.vmem [shape: f32[1,128], index: 8, kind: input, shape index: {}]   ;;  %s4915_s9 = inlined_call_operand.hbm [shape: f32[32,128], index: 9, kind: output, shape index: {}]  }
   0x1   :  { %4923 = sst [smem:[#allocation18_spill]] %s4907_s1 }
   0x2   :  { %14 = vsyncpa [#allocation3], 0 }
   0x3   :  { %16 = vsyncpa [#allocation3 + $0x1], 0 }
   0x4   :  { %17 = vsyncpa [#allocation6], 0 }
   0x5   :  { %18 = vsyncpa [#allocation9], 0 }
   0x6   :  { %19 = vsyncpa [#allocation4], 0 }
   0x7   :  { %21 = vsyncpa [#allocation4 + $0x1], 0  ;;  %s4511_s30 = smov 0   ;;  %s4513_s10 = smov 0  }
   0x8   :  { %s4515_s11 = smov 0   ;;  %s4517_s12 = smov 0  }
   0x9 LB: > { %4924 = sst [smem:[#allocation16_spill]] %s4427_s30  ;;  %s4532_s13 = sadd.s32 4294967295, %s4439_s12   ;;  %s4439_s12 = sphi %s4517_s12, %s4951_s12   ;;  %s4435_s11 = sphi %s4515_s11, %s4950_s11   ;;  %s4431_s10 = sphi %s4513_s10, %s4949_s10   ;;  %s4427_s30 = sphi %s4511_s30, %s4948_s30  }
   0xa   : > { %s3253_s14 = sadd.s32 4294967294, %s4439_s12   ;;  %p47_p0 = scmp.ne.s32.totalorder %s4431_s10, %s4427_s30 }
   0xb   : > { %p4916_p1 = scmp.eq.s32.totalorder %s4532_s13, 0  ;;  %p245_p3 = scmp.eq.s32.totalorder %s3253_s14, 1 }
   0xc   : > { %p3254_p5 = scmp.ge.s32.totalorder %s4439_s12, 1  ;;  %p252_p7 = scmp.lt.s32.totalorder %s4439_s12, 3 }
   0xd   : > { %p4541_p4 = por %p4916_p1, %p47_p0  ;;  %p4546_p6 = por %p245_p3, %p47_p0 }
   0xe   : > { %p4551_p8 = pnand %p3254_p5, %p252_p7  ;;  %s4441_s18 = smov [#allocation5]  }
   0xf   : > { %s4925_s15 = scalar_select %p4541_p4, 1, 0 }
  0x10   : > { %s4926_s16 = scalar_select %p4546_p6, 1, 0 }
  0x11   : > { %s4928_s17 = scalar_select %p4551_p8, 1, 0 }
  0x12   : > { %4927 = sst [smem:[#allocation17_spill]] %s4926_s16  ;;  %s264_s19 = sshll.u32 %s4441_s18, 4  ;;  %s4555_s19 = int_to_ptr.vmem [resolvable:$true] %s264_s19 }
  0x13   : > { %p3754_p9 = pneg %p4551_p8  ;;  %s4442_s21 = smov [#allocation8]  }
  0x14   : > { %s296_s22 = sshll.u32 %s4442_s21, 4  ;;  %s4930_s1 = sld [smem:[#allocation18_spill]]  ;;  %s4566_s22 = int_to_ptr.vmem [resolvable:$true] %s296_s22 }
  0x15   : > { %p4562_p11 = pnand %p3754_p9, %p4916_p1 }
  0x17   : > { %p4576_p13 = pneg %p4562_p11 }
  0x1a   : > { %s4223_s25 = scalar_lea.hbm %s4930_s1, 18816 }
  0x1b   : > { %p4224_p12 = scmp.ne.s32.totalorder %s4930_s1, %s4223_s25  ;;  %p4230_p5 = scmp.lt.u32.totalorder %s4223_s25, %s4930_s1 }
  0x1d   : > { %p4226_p0 = pnand %p4576_p13, %p4224_p12 }
  0x1f   : > { %p4227_p3 = pneg %p4226_p0 }
  0x21   : > { %p4232_p7 = pnand %p4230_p5, %p4227_p3 }
  0x23   : > { %4235 = shalt.err (!%p4232_p7)
}
  0x24   : > { %s4236_s18 = scalar_lea.vmem %s4555_s19, 18816  ;;  %p4244_p2 = scmp.lt.s32.totalorder %s4555_s19, %s4555_s19 }
  0x25   : > { %p4237_p9 = scmp.ne.s32.totalorder %s4555_s19, %s4236_s18  ;;  %p4245_p6 = scmp.lt.s32.totalorder %s4236_s18, %s4236_s18 }
  0x27   : > { %p4239_p10 = pnand %p4237_p9, %p4576_p13  ;;  %p4246_p12 = por %p4245_p6, %p4244_p2 }
  0x29   : > { %p4240_p1 = pneg %p4239_p10 }
  0x2b   : > { %p4247_p0 = pnand %p4246_p12, %p4240_p1 }
  0x2d   : > { %4250 = shalt.err (!%p4247_p0)
}
  0x2e   : > { %s4919_s21 = smov 192   ;;  %s4920_s23 = smov 12  }
  0x2f   : > { %3757 = dma.hbm_to_vmem [thread:$0]  (!%p4562_p11), %s4930_s1, 18816, %s4555_s19, [#allocation6], %s4919_s21, %s4919_s21, %s4920_s23  }
  0x30   : > { %s4251_s29 = scalar_lea.hbm %s4911_s5, 6144 }
  0x31   : > { %p4252_p1 = scmp.ne.s32.totalorder %s4911_s5, %s4251_s29  ;;  %p4258_p10 = scmp.lt.u32.totalorder %s4251_s29, %s4911_s5 }
  0x33   : > { %p4254_p2 = pnand %p4252_p1, %p4576_p13 }
  0x35   : > { %p4255_p6 = pneg %p4254_p2 }
  0x37   : > { %p4260_p3 = pnand %p4258_p10, %p4255_p6 }
  0x39   : > { %4263 = shalt.err (!%p4260_p3)
}
  0x3a   : > { %s4264_s19 = scalar_lea.vmem %s4566_s22, 6144  ;;  %p4272_p12 = scmp.lt.s32.totalorder %s4566_s22, %s4566_s22 }
  0x3b   : > { %p4265_p5 = scmp.ne.s32.totalorder %s4566_s22, %s4264_s19  ;;  %p4273_p0 = scmp.lt.s32.totalorder %s4264_s19, %s4264_s19 }
  0x3d   : > { %p4267_p7 = pnand %p4265_p5, %p4576_p13  ;;  %p4274_p1 = por %p4273_p0, %p4272_p12 }
  0x3f   : > { %p4268_p9 = pneg %p4267_p7 }
  0x41   : > { %p4275_p2 = pnand %p4274_p1, %p4268_p9 }
  0x43   : > { %4278 = shalt.err (!%p4275_p2)
}
  0x44   : > { %s4445_s24 = smov 128   ;;  %s4446_s30 = smov 8  }
  0x45   : > { %3763 = dma.hbm_to_vmem [thread:$0]  (!%p4562_p11), %s4911_s5, 6144, %s4566_s22, [#allocation9], %s4445_s24, %s4445_s24, %s4446_s30  }
  0x46   : > { %s4447_s26 = smov [#allocation7]   ;;  %s4448_s29 = smov [#allocation10]  }
  0x47   : > { %s280_s27 = sshll.u32 %s4447_s26, 4  ;;  %s312_s14 = sshll.u32 %s4448_s29, 4  ;;  %s281_s27 = int_to_ptr.vmem [resolvable:$true] %s280_s27  ;;  %s4623_s14 = int_to_ptr.vmem [resolvable:$true] %s312_s14 }
  0x48   : > { %s4279_s21 = scalar_lea.hbm %s4909_s3, 9216 }
  0x49   : > { %p4280_p6 = scmp.ne.s32.totalorder %s4909_s3, %s4279_s21  ;;  %p4286_p5 = scmp.lt.u32.totalorder %s4279_s21, %s4909_s3 }
  0x4b   : > { %p4282_p10 = pnand %p4280_p6, %p4576_p13 }
  0x4d   : > { %p4283_p3 = pneg %p4282_p10 }
  0x4f   : > { %p4288_p7 = pnand %p4286_p5, %p4283_p3 }
  0x51   : > { %4291 = shalt.err (!%p4288_p7)
}
  0x52   : > { %s4292_s24 = scalar_lea.vmem %s281_s27, 9216  ;;  %p4300_p1 = scmp.lt.s32.totalorder %s281_s27, %s281_s27 }
  0x53   : > { %p4293_p9 = scmp.ne.s32.totalorder %s281_s27, %s4292_s24  ;;  %p4301_p2 = scmp.lt.s32.totalorder %s4292_s24, %s4292_s24 }
  0x55   : > { %p4295_p12 = pnand %p4293_p9, %p4576_p13  ;;  %p4302_p4 = por %p4301_p2, %p4300_p1 }
  0x57   : > { %p4296_p0 = pneg %p4295_p12 }
  0x59   : > { %p4303_p8 = pnand %p4302_p4, %p4296_p0 }
  0x5b   : > { %4306 = shalt.err (!%p4303_p8)
}
  0x5c   : > { %s4932_s1 = smov 12   ;;  %s4933_s23 = smov 192  }
  0x5d   : > { %3760 = dma.hbm_to_vmem [thread:$0]  (!%p4562_p11), %s4909_s3, 9216, %s281_s27, [#allocation6], %s4933_s23, %s4933_s23, %s4932_s1  }
  0x5e   : > { %s4307_s29 = scalar_lea.hbm %s4913_s7, 2048 }
  0x5f   : > { %p4308_p6 = scmp.ne.s32.totalorder %s4913_s7, %s4307_s29  ;;  %p4314_p10 = scmp.lt.u32.totalorder %s4307_s29, %s4913_s7 }
  0x61   : > { %p4310_p4 = pnand %p4308_p6, %p4576_p13 }
  0x63   : > { %p4311_p8 = pneg %p4310_p4 }
  0x65   : > { %p4316_p3 = pnand %p4314_p10, %p4311_p8 }
  0x67   : > { %4319 = shalt.err (!%p4316_p3)
}
  0x68   : > { %s4320_s27 = scalar_lea.vmem %s4623_s14, 2048  ;;  %p4328_p12 = scmp.lt.s32.totalorder %s4623_s14, %s4623_s14 }
  0x69   : > { %p4321_p5 = scmp.ne.s32.totalorder %s4623_s14, %s4320_s27  ;;  %p4329_p0 = scmp.lt.s32.totalorder %s4320_s27, %s4320_s27 }
  0x6b   : > { %p4323_p7 = pnand %p4321_p5, %p4576_p13  ;;  %p4330_p1 = por %p4329_p0, %p4328_p12 }
  0x6d   : > { %p4324_p9 = pneg %p4323_p7 }
  0x6f   : > { %p4331_p2 = pnand %p4330_p1, %p4324_p9 }
  0x71   : > { %4334 = shalt.err (!%p4331_p2)
}
  0x72   : > { %s4449_s24 = smov 64   ;;  %s4450_s28 = smov 4  }
  0x73   : > { %3766 = dma.hbm_to_vmem [thread:$0]  (!%p4562_p11), %s4913_s7, 2048, %s4623_s14, [#allocation9], %s4449_s24, %s4449_s24, %s4450_s28  }
  0x74   : > { %s4670_s30 = sadd.s32 1, %s4439_s12   ;;  %s34_s25 = sadd.s32 1, %s4435_s11 }
  0x75   : > { %s31_s21 = ssub.s32 %s4439_s12, %s4670_s30  ;;  %p41_p6 = scmp.ne.s32.totalorder %s4435_s11, %s4431_s10 }
  0x76   : > { %p32_p13 = scmp.eq.s32.totalorder %s31_s21, 0  ;;  %p42_p4 = scmp.eq.s32.totalorder %s4439_s12, 0 }
  0x77   : > { %p4934_p10 = scmp.eq.s32.totalorder %s4532_s13, 1  ;;  %p3779_p5 = scmp.lt.s32.totalorder %s4439_s12, 2 }
  0x78   : > { %s4679_s26 = scalar_select %p32_p13, %s4435_s11, %s34_s25  }
  0x79   : > { %p43_p8 = por %p42_p4, %p41_p6  ;;  %p4683_p3 = por %p4934_p10, %p41_p6 }
  0x7a   : > { %s329_s20 = sand.u32 1, %s4435_s11   ;;  %s3732_s14 = smul.u32 1792, %s4439_s12 }
  0x7b   : > { %s3731_s18 = smul.u32 112, %s329_s20  ;;  %p4690_p11 = pnand %p3779_p5, %p43_p8 }
  0x7c   : > { %s4697_s27 = scalar_lea.hbm %s4906_s0, %s3732_s14  ;;  %s4701_s1 = scalar_lea.sflag [#allocation3], %s329_s20 }
  0x7d   : > { %s333_s24 = scalar_lea.vmem [#allocation2], %s3731_s18  ;;  %s4335_s23 = scalar_lea.hbm %s4697_s27, 1792 }
  0x7e   : > { %s341_s28 = sshll.u32 %s333_s24, 4  ;;  %p4336_p7 = scmp.ne.s32.totalorder %s4697_s27, %s4335_s23  ;;  %s4699_s28 = int_to_ptr.vmem [resolvable:$true] %s341_s28 }
  0x7f   : > { %p4337_p9 = pneg %p4690_p11  ;;  %s4340_s14 = scalar_lea.hbm %s4906_s0, 3584 }
  0x80   : > { %p4341_p1 = scmp.lt.u32.totalorder %s4697_s27, %s4906_s0  ;;  %p4342_p2 = scmp.lt.u32.totalorder %s4340_s14, %s4335_s23 }
  0x81   : > { %p4338_p12 = pnand %p4337_p9, %p4336_p7  ;;  %p4344_p6 = scmp.lt.u32.totalorder %s4335_s23, %s4697_s27 }
  0x82   : > { %p4343_p13 = por %p4342_p2, %p4341_p1 }
  0x83   : > { %p4339_p0 = pneg %p4338_p12 }
  0x84   : > { %p4345_p4 = por %p4344_p6, %p4343_p13 }
  0x86   : > { %p4346_p8 = pnand %p4345_p4, %p4339_p0 }
  0x88   : > { %4349 = shalt.err (!%p4346_p8)
}
  0x89   : > { %s4350_s20 = scalar_lea.vmem %s4699_s28, 1792  ;;  %s4451_s18 = smov [#allocation2]  }
  0x8a   : > { %p4351_p10 = scmp.ne.s32.totalorder %s4699_s28, %s4350_s20  ;;  %s4355_s24 = sshll.u32 %s4451_s18, 4  ;;  %s4356_s24 = int_to_ptr.vmem [resolvable:$false] %s4355_s24 }
  0x8b   : > { %s4357_s21 = scalar_lea.vmem %s4356_s24, 3584  ;;  %p4358_p12 = scmp.lt.s32.totalorder %s4699_s28, %s4356_s24 }
  0x8c   : > { %p4353_p5 = pnand %p4351_p10, %p4337_p9  ;;  %p4359_p1 = scmp.lt.s32.totalorder %s4357_s21, %s4350_s20 }
  0x8e   : > { %p4354_p7 = pneg %p4353_p5  ;;  %p4360_p2 = por %p4359_p1, %p4358_p12 }
  0x90   : > { %p4361_p13 = pnand %p4360_p2, %p4354_p7 }
  0x92   : > { %4364 = shalt.err (!%p4361_p13)
}
  0x93   : > { %s4452_s23 = smov 896   ;;  %s4453_s25 = smov 56  }
  0x94   : > { %3770 = dma.hbm_to_vmem [thread:$0]  (!%p4690_p11), %s4697_s27, 1792, %s4699_s28, %s4701_s1, %s4452_s23, %s4452_s23, %s4453_s25  }
  0x95   : > { %p4937_p9 = scmp.ne.s32.totalorder %s4928_s17, 0 }
  0x96   : > { %s4732_s14 = sand.u32 (!%p4937_p9), 1, %s4431_s10   ;;  %p4938_p0 = scmp.ne.s32.totalorder (!%p4937_p9), %s4925_s15, 0 }
  0x97   : > { %353 = sbr.rel (%p4937_p9) target bundleno = 1683 (0x693), region = 56  ;;  %s356_s22 = scalar_lea.sflag (!%p4937_p9), [#allocation3], %s4732_s14 }
  0x98   : > { %s3733_s16 = smul.u32 (!%p4937_p9), 112, %s4732_s14 }
  0x9a   : > { %s4736_s20 = scalar_lea.vmem (!%p4937_p9), [#allocation2], %s3733_s16 }
  0x9e   : > { %4410 = dma.done.wait (%p4938_p0), %s356_s22, 1792  }
  0x9f   : > { %4412 = vsyncadd (%p4938_p0), %s356_s22, 4294965504  ;;  %p4939_p11 = scmp.eq.s32.totalorder %s4532_s13, 0 }
  0xa1   : > { %4414 = dma.done.wait (%p4939_p11), [#allocation6], 28032   ;;  %p4940_p6 = pmov %p4939_p11 }
  0xa3   : > { %4416 = vsyncadd (%p4940_p6), [#allocation6], 4294939264  ;;  %p4941_p4 = pmov %p4940_p6 }
  0xa5   : > { %4418 = dma.done.wait (%p4941_p4), [#allocation9], 8192   ;;  %p4942_p8 = pmov %p4941_p4 }
  0xa6   : > { %v3835_v0 = vld [vmem:[#allocation5 + $0x4] ss:$12 sps:$4 sm:$0xff]   ;;  %v3837_v1 = vld [vmem:[#allocation5] ss:$12 sps:$4 sm:$0xff]   ;;  %v3838_v2 = vld [vmem:[#allocation5 + $0x1c] ss:$12 sps:$4 sm:$0xff]  }
  0xa7   : > { %4420 = vsyncadd (%p4942_p8), [#allocation9], 4294959104  ;;  %1418 = vmatprep.subr.bf16.mxu0 %v3835_v0  ;;  %v3840_v3 = vld [vmem:[#allocation5 + $0x18] ss:$12 sps:$4 sm:$0xff]   ;;  %v3841_v4 = vld [vmem:[#allocation5 + $0x34] ss:$12 sps:$4 sm:$0xff]  }
  0xa8   : > { %1419 = vmatpush1.bf16.msra.mxu0 %v3837_v1  ;;  %v3843_v5 = vld [vmem:[#allocation5 + $0x30] ss:$12 sps:$4 sm:$0xff]   ;;  %v3844_v6 = vld [vmem:[#allocation5 + $0x4c] ss:$12 sps:$4 sm:$0xff]   ;;  %v3846_v7 = vld [vmem:[#allocation5 + $0x48] ss:$12 sps:$4 sm:$0xff]  }
  0xa9   : > { %1420 = vmatprep.subr.bf16.mxu0 %v3838_v2  ;;  %v3847_v8 = vld [vmem:[#allocation5 + $0x64] ss:$12 sps:$4 sm:$0xff]   ;;  %v3849_v9 = vld [vmem:[#allocation5 + $0x60] ss:$12 sps:$4 sm:$0xff]   ;;  %v3850_v10 = vld [vmem:[#allocation5 + $0x7c] ss:$12 sps:$4 sm:$0xff]  }
  0xaa   : > { %v3852_v11 = vld [vmem:[#allocation5 + $0x78] ss:$12 sps:$4 sm:$0xff]   ;;  %v3853_v12 = vld [vmem:[#allocation5 + $0x94] ss:$12 sps:$4 sm:$0xff]   ;;  %v3855_v16 = vld [vmem:[#allocation5 + $0x90] ss:$12 sps:$4 sm:$0xff]  }
  0xab   : > { %v414_v13 = vld [vmem:[%s4736_s20 + $0x8] sm:$0xff]  ;;  %v421_v14 = vld [vmem:[%s4736_s20 + $0x40] sm:$0xff]  ;;  %v420_v51 = vld [vmem:[%s4736_s20 + $0x38] sm:$0xff]  ;;  %vm4455_vm0 = vmmov 0   ;;  %vm1414_vm1 = vcmask 130048   ;;  %s3268_s21 = sshll.u32 %s4732_s14, 4 }
  0xac   : > { %1421 = vmatpush1.bf16.msra.mxu0 %v3840_v3  ;;  %v428_v15 = vpack.c.bf16 %v421_v14, %v414_v13  ;;  %v3856_v17 = vld [vmem:[#allocation5 + $0xac] ss:$12 sps:$4 sm:$0xff]   ;;  %v3886_v18 = vld [vmem:[#allocation5 + $0xc8] ss:$12 sps:$4 sm:$0xff]   ;;  %v3859_v21 = vld [vmem:[#allocation5 + $0xc4] ss:$12 sps:$4 sm:$0xff]  }
  0xad   : > { %1422 = vmatprep.subr.bf16.mxu0 %v3841_v4  ;;  %v3887_v19 = vld [vmem:[#allocation5 + $0x8] ss:$12 sps:$4 sm:$0xff]   ;;  %3564 = vmatprep.subr.bf16.mxu1 %v3886_v18  ;;  %v3891_v22 = vld [vmem:[#allocation5 + $0xe0] ss:$12 sps:$4 sm:$0xff]   ;;  %v3896_v26 = vld [vmem:[#allocation5 + $0xf8] ss:$12 sps:$4 sm:$0xff]  }
  0xae   : > { %1450 = vmatprep.mubr.bf16.mxu0 %v428_v15  ;;  %1622 = vmatprep.mubr.bf16.mxu1 %v428_v15  ;;  %v3858_v20 = vld [vmem:[#allocation5 + $0xa8] ss:$12 sps:$4 sm:$0xff]   ;;  %v3892_v23 = vld [vmem:[#allocation5 + $0x20] ss:$12 sps:$4 sm:$0xff]   ;;  %v3897_v27 = vld [vmem:[#allocation5 + $0x38] ss:$12 sps:$4 sm:$0xff]  }
  0xaf   : > { %3565 = vmatpush3.bf16.msra.mxu1 %v3887_v19  ;;  %v3861_v24 = vld [vmem:[#allocation5 + $0xc0] ss:$12 sps:$4 sm:$0xff]   ;;  %v3862_v25 = vld [vmem:[#allocation5 + $0xdc] ss:$12 sps:$4 sm:$0xff]   ;;  %v3864_v28 = vld [vmem:[#allocation5 + $0xd8] ss:$12 sps:$4 sm:$0xff]  }
  0xb0   : > { %1423 = vmatpush1.bf16.msra.mxu0 %v3843_v5  ;;  %3566 = vmatprep.subr.bf16.mxu1 %v3891_v22  ;;  %v3901_v29 = vld [vmem:[#allocation5 + $0x110] ss:$12 sps:$4 sm:$0xff]   ;;  %v3865_v31 = vld [vmem:[#allocation5 + $0xf4] ss:$12 sps:$4 sm:$0xff]   ;;  %v3868_v35 = vld [vmem:[#allocation5 + $0x10c] ss:$12 sps:$4 sm:$0xff]  }
  0xb1   : > { %1424 = vmatprep.subr.bf16.mxu0 %v3844_v6  ;;  %v3902_v30 = vld [vmem:[#allocation5 + $0x50] ss:$12 sps:$4 sm:$0xff]   ;;  %v3906_v33 = vld [vmem:[#allocation5 + $0x128] ss:$12 sps:$4 sm:$0xff]   ;;  %v3911_v36 = vld [vmem:[#allocation5 + $0x140] ss:$12 sps:$4 sm:$0xff]  }
  0xb2   : > { %v3867_v32 = vld [vmem:[#allocation5 + $0xf0] ss:$12 sps:$4 sm:$0xff]   ;;  %v3907_v34 = vld [vmem:[#allocation5 + $0x68] ss:$12 sps:$4 sm:$0xff]   ;;  %v3912_v39 = vld [vmem:[#allocation5 + $0x80] ss:$12 sps:$4 sm:$0xff]  }
  0xb3   : > { %3567 = vmatpush3.bf16.msra.mxu1 %v3892_v23  ;;  %v3870_v37 = vld [vmem:[#allocation5 + $0x108] ss:$12 sps:$4 sm:$0xff]   ;;  %v3871_v38 = vld [vmem:[#allocation5 + $0x124] ss:$12 sps:$4 sm:$0xff]   ;;  %v3873_v41 = vld [vmem:[#allocation5 + $0x120] ss:$12 sps:$4 sm:$0xff]  }
  0xb4   : > { %1425 = vmatpush1.bf16.msra.mxu0 %v3846_v7  ;;  %3568 = vmatprep.subr.bf16.mxu1 %v3896_v26  ;;  %v3916_v40 = vld [vmem:[#allocation5 + $0x158] ss:$12 sps:$4 sm:$0xff]   ;;  %v3874_v42 = vld [vmem:[#allocation5 + $0x13c] ss:$12 sps:$4 sm:$0xff]   ;;  %v3877_v46 = vld [vmem:[#allocation5 + $0x154] ss:$12 sps:$4 sm:$0xff]  }
  0xb5   : > { %1426 = vmatprep.subr.bf16.mxu0 %v3847_v8  ;;  %v3917_v43 = vld [vmem:[#allocation5 + $0x98] ss:$12 sps:$4 sm:$0xff]   ;;  %v3921_v44 = vld [vmem:[#allocation5 + $0x170] ss:$12 sps:$4 sm:$0xff]   ;;  %v3926_v48 = vld [vmem:[#allocation5 + $0x248] ss:$12 sps:$4 sm:$0xff]  }
  0xb6   : > { %v3876_v45 = vld [vmem:[#allocation5 + $0x138] ss:$12 sps:$4 sm:$0xff]   ;;  %v3922_v47 = vld [vmem:[#allocation5 + $0xb0] ss:$12 sps:$4 sm:$0xff]   ;;  %v3927_v53 = vld [vmem:[#allocation5 + $0x188] ss:$12 sps:$4 sm:$0xff]  }
  0xb7   : > { %3569 = vmatpush3.bf16.msra.mxu1 %v3897_v27  ;;  %v3879_v49 = vld [vmem:[#allocation5 + $0x150] ss:$12 sps:$4 sm:$0xff]   ;;  %v3880_v52 = vld [vmem:[#allocation5 + $0x16c] ss:$12 sps:$4 sm:$0xff]   ;;  %v3882_v56 = vld [vmem:[#allocation5 + $0x168] ss:$12 sps:$4 sm:$0xff]  }
  0xb8   : > { %1427 = vmatpush1.bf16.msra.mxu0 %v3849_v9  ;;  %3570 = vmatprep.subr.bf16.mxu1 %v3901_v29  ;;  %v413_v50 = vld [vmem:[%s4736_s20] sm:$0xff]  ;;  %v3890_v61 = vld [vmem:[#allocation5 + $0x19c] ss:$12 sps:$4 sm:$0xff]   ;;  %v3900_v5 = vld [vmem:[#allocation5 + $0x1cc] ss:$12 sps:$4 sm:$0xff]   ;;  %s409_s23 = scalar_lea.vmem [#allocation11], %s3268_s21 }
  0xb9   : > { %1428 = vmatprep.subr.bf16.mxu0 %v3850_v10  ;;  %v427_v54 = vpack.c.bf16 %v420_v51, %v413_v50  ;;  %v3931_v55 = vld [vmem:[#allocation5 + $0x260] ss:$12 sps:$4 sm:$0xff]   ;;  %v3885_v58 = vld [vmem:[#allocation5 + $0x184] ss:$12 sps:$4 sm:$0xff]   ;;  %v3946_v3 = vld [vmem:[#allocation5 + $0x2a8] ss:$12 sps:$4 sm:$0xff]  }
  0xba   : > { %v3932_v57 = vld [vmem:[#allocation5 + $0x1a0] ss:$12 sps:$4 sm:$0xff]   ;;  %v3936_v59 = vld [vmem:[#allocation5 + $0x278] ss:$12 sps:$4 sm:$0xff]   ;;  %v3941_v63 = vld [vmem:[#allocation5 + $0x290] ss:$12 sps:$4 sm:$0xff]  }
  0xbb   : > { %3571 = vmatpush3.bf16.msra.mxu1 %v3902_v30  ;;  %v3883_v60 = vld [vmem:[#allocation5 + $0x180] ss:$12 sps:$4 sm:$0xff]   ;;  %v3937_v62 = vld [vmem:[#allocation5 + $0x1b8] ss:$12 sps:$4 sm:$0xff]   ;;  %v3942_v2 = vld [vmem:[#allocation5 + $0x1d0] ss:$12 sps:$4 sm:$0xff]  }
  0xbc   : > { %1429 = vmatpush1.bf16.msra.mxu0 %v3852_v11  ;;  %3572 = vmatprep.subr.bf16.mxu1 %v3906_v33  ;;  %v3888_v0 = vld [vmem:[#allocation5 + $0x198] ss:$12 sps:$4 sm:$0xff]   ;;  %v3895_v1 = vld [vmem:[#allocation5 + $0x1b4] ss:$12 sps:$4 sm:$0xff]   ;;  %v3893_v4 = vld [vmem:[#allocation5 + $0x1b0] ss:$12 sps:$4 sm:$0xff]  }
  0xbd   : > { %1430 = vmatprep.subr.bf16.mxu0 %v3853_v12  ;;  %v3947_v6 = vld [vmem:[#allocation5 + $0x1e8] ss:$12 sps:$4 sm:$0xff]   ;;  %v3951_v7 = vld [vmem:[#allocation5 + $0x2c0] ss:$12 sps:$4 sm:$0xff]   ;;  %v3905_v9 = vld [vmem:[#allocation5 + $0x1e4] ss:$12 sps:$4 sm:$0xff]  }
  0xbe   : > { %v3898_v8 = vld [vmem:[#allocation5 + $0x1c8] ss:$12 sps:$4 sm:$0xff]   ;;  %v3952_v10 = vld [vmem:[#allocation5 + $0x200] ss:$12 sps:$4 sm:$0xff]   ;;  %v3956_v11 = vld [vmem:[#allocation5 + $0x2d8] ss:$12 sps:$4 sm:$0xff]  }
  0xbf   : > { %3573 = vmatpush3.bf16.msra.mxu1 %v3907_v34  ;;  %v416_v12 = vld [vmem:[%s4736_s20 + $0x18] sm:$0xff]  ;;  %v423_v13 = vld [vmem:[%s4736_s20 + $0x50] sm:$0xff]  ;;  %v422_v23 = vld [vmem:[%s4736_s20 + $0x48] sm:$0xff]  ;;  %s3142_s25 = sshll.u32 %s409_s23, 4  ;;  %s3563_s16 = sshll.u32 %s4532_s13, 8  ;;  %s4857_s25 = int_to_ptr.vmem [resolvable:$true] %s3142_s25 }
  0xc0   : > { %1431 = vmatpush1.bf16.msra.mxu0 %v3855_v16  ;;  %3574 = vmatprep.subr.bf16.mxu1 %v3911_v36  ;;  %v430_v14 = vpack.c.bf16 %v423_v13, %v416_v12  ;;  %v3903_v15 = vld [vmem:[#allocation5 + $0x1e0] ss:$12 sps:$4 sm:$0xff]   ;;  %v3910_v16 = vld [vmem:[#allocation5 + $0x1fc] ss:$12 sps:$4 sm:$0xff]   ;;  %v3908_v19 = vld [vmem:[#allocation5 + $0x1f8] ss:$12 sps:$4 sm:$0xff]   ;;  %s4862_s15 = scalar_lea.hbm %s4915_s9, %s3563_s16 }
  0xc1   : > { %1432 = vmatprep.subr.bf16.mxu0 %v3856_v17  ;;  %v3957_v17 = vld [vmem:[#allocation5 + $0x218] ss:$12 sps:$4 sm:$0xff]   ;;  %v3961_v18 = vld [vmem:[#allocation5 + $0x2f0] ss:$12 sps:$4 sm:$0xff]   ;;  %v3967_v27 = vld [vmem:[#allocation5 + $0x308] ss:$12 sps:$4 sm:$0xff]  }
  0xc2   : > { %v415_v22 = vld [vmem:[%s4736_s20 + $0x10] sm:$0xff]  ;;  %s3129_s17 = scalar_lea.sflag [#allocation4], %s4732_s14  ;;  %s4365_s19 = scalar_lea.vmem %s4857_s25, 256 }
  0xc3   : > { %3575 = vmatpush3.bf16.msra.mxu1 %v3912_v39  ;;  %v4758_v26 = vpack.c.bf16 %v422_v23, %v415_v22  ;;  %v3971_v29 = vld [vmem:[#allocation5 + $0x3e0] ss:$12 sps:$4 sm:$0xff]   ;;  %v3918_v30 = vld [vmem:[#allocation5 + $0x228] ss:$12 sps:$4 sm:$0xff]   ;;  %v3976_v33 = vld [vmem:[#allocation5 + $0x3f8] ss:$12 sps:$4 sm:$0xff]   ;;  %p4366_p10 = scmp.ne.s32.totalorder %s4857_s25, %s4365_s19 }
  0xc4   : > { %1433 = vmatpush1.bf16.msra.mxu0 %v3858_v20  ;;  %3576 = vmatprep.subr.bf16.mxu1 %v3916_v40  ;;  %v3962_v20 = vld [vmem:[#allocation5 + $0x230] ss:$12 sps:$4 sm:$0xff]   ;;  %v3923_v34 = vld [vmem:[#allocation5 + $0x240] ss:$12 sps:$4 sm:$0xff]   ;;  %v3977_v36 = vld [vmem:[#allocation5 + $0x338] ss:$12 sps:$4 sm:$0xff]  }
  0xc5   : > { %1434 = vmatprep.subr.bf16.mxu0 %v3859_v21  ;;  %v3915_v21 = vld [vmem:[#allocation5 + $0x214] ss:$12 sps:$4 sm:$0xff]   ;;  %v3982_v40 = vld [vmem:[#allocation5 + $0x350] ss:$12 sps:$4 sm:$0xff]   ;;  %v3968_v13 = vld [vmem:[#allocation5 + $0x318] ss:$12 sps:$4 sm:$0xff]   ;;  %p4367_p5 = pnand %p4366_p10, %p4683_p3 }
  0xc6   : > { %v3935_v39 = vld [vmem:[#allocation5 + $0x274] ss:$12 sps:$4 sm:$0xff]   ;;  %v3945_v50 = vld [vmem:[#allocation5 + $0x2a4] ss:$12 sps:$4 sm:$0xff]   ;;  %v4039_v23 = vld [vmem:[#allocation7 + $0x34] ss:$12 sps:$4 sm:$0xff]  }
  0xc7   : > { %3577 = vmatpush3.bf16.msra.mxu1 %v3917_v43  ;;  %v3940_v43 = vld [vmem:[#allocation5 + $0x28c] ss:$12 sps:$4 sm:$0xff]   ;;  %v4036_v12 = vld [vmem:[#allocation7 + $0x1c] ss:$12 sps:$4 sm:$0xff]   ;;  %p4368_p7 = pneg %p4367_p5  ;;  %s4458_s13 = smov [#allocation11]  }
  0xc8   : > { %1435 = vmatpush1.bf16.msra.mxu0 %v3861_v24  ;;  %3578 = vmatprep.subr.bf16.mxu1 %v3921_v44  ;;  %v3966_v24 = vld [vmem:[#allocation5 + $0x3c8] ss:$12 sps:$4 sm:$0xff]   ;;  %v3992_v51 = vld [vmem:[#allocation5 + $0x380] ss:$12 sps:$4 sm:$0xff]   ;;  %s4369_s27 = sshll.u32 %s4458_s13, 4  ;;  %s4370_s27 = int_to_ptr.vmem [resolvable:$false] %s4369_s27 }
  0xc9   : > { %1436 = vmatprep.subr.bf16.mxu0 %v3862_v25  ;;  %v3913_v25 = vld [vmem:[#allocation5 + $0x210] ss:$12 sps:$4 sm:$0xff]   ;;  %v3987_v44 = vld [vmem:[#allocation5 + $0x368] ss:$12 sps:$4 sm:$0xff]   ;;  %s4371_s28 = scalar_lea.vmem %s4370_s27, 512  ;;  %p4372_p12 = scmp.lt.s32.totalorder %s4857_s25, %s4370_s27 }
  0xca   : > { %v4037_v22 = vld [vmem:[#allocation7 + $0x30] ss:$12 sps:$4 sm:$0xff]   ;;  %p4373_p1 = scmp.lt.s32.totalorder %s4371_s28, %s4365_s19 }
  0xcb   : > { %3579 = vmatpush3.bf16.msra.mxu1 %v3922_v47  ;;  %v425_v47 = vld [vmem:[%s4736_s20 + $0x60] sm:$0xff] }
  0xcc   : > { %1437 = vmatpush1.bf16.msra.mxu0 %v3864_v28  ;;  %3586 = vmatprep.subr.bf16.mxu1 %v3926_v48  ;;  %v3920_v28 = vld [vmem:[#allocation5 + $0x22c] ss:$12 sps:$4 sm:$0xff]   ;;  %v3938_v48 = vld [vmem:[#allocation5 + $0x288] ss:$12 sps:$4 sm:$0xff]   ;;  %p4374_p2 = por %p4373_p1, %p4372_p12 }
  0xcd   : > { %1438 = vmatprep.subr.bf16.mxu0 %v3865_v31  ;;  %v3925_v31 = vld [vmem:[#allocation5 + $0x244] ss:$12 sps:$4 sm:$0xff]  }
  0xce   : > { %1623 = vmatmul.mubr.bf16.vlgmr.msra.gmra.mrb[0].mxu1 %v427_v54  ;;  %p4375_p13 = pnand %p4374_p2, %p4368_p7 }
  0xcf   : > { %3587 = vmatpush3.bf16.msra.mxu1 %v3927_v53  ;;  %1663 = vmatprep.mubr.bf16.mxu1 %v430_v14  ;;  %v3943_v53 = vld [vmem:[#allocation5 + $0x2a0] ss:$12 sps:$4 sm:$0xff]  }
  0xd0   : > { %1439 = vmatpush1.bf16.msra.mxu0 %v3867_v32  ;;  %3588 = vmatprep.subr.bf16.mxu1 %v3931_v55  ;;  %v3972_v32 = vld [vmem:[#allocation5 + $0x320] ss:$12 sps:$4 sm:$0xff]   ;;  %v3997_v55 = vld [vmem:[#allocation5 + $0x398] ss:$12 sps:$4 sm:$0xff]  }
  0xd1   : > { %1440 = vmatprep.subr.bf16.mxu0 %v3868_v35  ;;  %v3930_v35 = vld [vmem:[#allocation5 + $0x25c] ss:$12 sps:$4 sm:$0xff]  }
  0xd3   : > { %3589 = vmatpush3.bf16.msra.mxu1 %v3932_v57  ;;  %v3948_v57 = vld [vmem:[#allocation5 + $0x2b8] ss:$12 sps:$4 sm:$0xff]  }
  0xd4   : > { %1441 = vmatpush1.bf16.msra.mxu0 %v3870_v37  ;;  %3590 = vmatprep.subr.bf16.mxu1 %v3936_v59  ;;  %v3981_v37 = vld [vmem:[#allocation5 + $0x410] ss:$12 sps:$4 sm:$0xff]  }
  0xd5   : > { %1442 = vmatprep.subr.bf16.mxu0 %v3871_v38  ;;  %v3928_v38 = vld [vmem:[#allocation5 + $0x258] ss:$12 sps:$4 sm:$0xff]  }
  0xd6   : > { %v417_v59 = vld [vmem:[%s4736_s20 + $0x20] sm:$0xff] }
  0xd7   : > { %3591 = vmatpush3.bf16.msra.mxu1 %v3937_v62  ;;  %v3953_v62 = vld [vmem:[#allocation5 + $0x2d0] ss:$12 sps:$4 sm:$0xff]  }
  0xd8   : > { %1443 = vmatpush1.bf16.msra.mxu0 %v3873_v41  ;;  %3592 = vmatprep.subr.bf16.mxu1 %v3941_v63  ;;  %v3986_v41 = vld [vmem:[#allocation5 + $0x428] ss:$12 sps:$4 sm:$0xff]  }
  0xd9   : > { %1444 = vmatprep.subr.bf16.mxu0 %v3874_v42  ;;  %v3933_v42 = vld [vmem:[#allocation5 + $0x270] ss:$12 sps:$4 sm:$0xff]  }
  0xdb   : > { %3593 = vmatpush3.bf16.msra.mxu1 %v3942_v2  ;;  %v4454_v2 = vmov 0.0  }
  0xdc   : > { %1445 = vmatpush1.bf16.msra.mxu0 %v3876_v45  ;;  %3594 = vmatprep.subr.bf16.mxu1 %v3946_v3  ;;  %v3991_v45 = vld [vmem:[#allocation5 + $0x440] ss:$12 sps:$4 sm:$0xff]   ;;  %v3958_v3 = vld [vmem:[#allocation5 + $0x2e8] ss:$12 sps:$4 sm:$0xff]  }
  0xdd   : > { %1446 = vmatprep.subr.bf16.mxu0 %v3877_v46  ;;  %v418_v46 = vld [vmem:[%s4736_s20 + $0x28] sm:$0xff] }
  0xdf   : > { %3595 = vmatpush3.bf16.msra.mxu1 %v3947_v6  ;;  %v4033_v6 = vld [vmem:[#allocation7 + $0x4] ss:$12 sps:$4 sm:$0xff]  }
  0xe0   : > { %1447 = vmatpush1.bf16.msra.mxu0 %v3879_v49  ;;  %3596 = vmatprep.subr.bf16.mxu1 %v3951_v7  ;;  %v432_v49 = vpack.c.bf16 %v425_v47, %v418_v46  ;;  %v3965_v7 = vld [vmem:[#allocation5 + $0x304] ss:$12 sps:$4 sm:$0xff]   ;;  %v4025_v46 = vld [vmem:[#allocation5 + $0x468] ss:$12 sps:$4 sm:$0xff]  }
  0xe1   : > { %1448 = vmatprep.subr.bf16.mxu0 %v3880_v52  ;;  %v3996_v52 = vld [vmem:[#allocation5 + $0x458] ss:$12 sps:$4 sm:$0xff]  }
  0xe2   : > { %v4030_v47 = vld [vmem:[#allocation5 + $0x484] ss:$12 sps:$4 sm:$0xff]  }
  0xe3   : > { %3597 = vmatpush3.bf16.msra.mxu1 %v3952_v10 }
  0xe4   : > { %1449 = vmatpush1.bf16.msra.mxu0 %v3882_v56  ;;  %3598 = vmatprep.subr.bf16.mxu1 %v3956_v11  ;;  %v4001_v56 = vld [vmem:[#allocation5 + $0x470] ss:$12 sps:$4 sm:$0xff]   ;;  %v4031_v11 = vld [vmem:[#allocation7] ss:$12 sps:$4 sm:$0xff]  }
  0xe5   : > { %1461 = vmatprep.subr.bf16.mxu0 %v3885_v58  ;;  %v4002_v58 = vld [vmem:[#allocation5 + $0x3b0] ss:$12 sps:$4 sm:$0xff]  }
  0xe7   : > { %1451 = vmatmul.mubr.bf16.vlgmr.msra.gmra.mrb[0].mxu0 %v427_v54  ;;  %3599 = vmatpush3.bf16.msra.mxu1 %v3957_v17  ;;  %v3950_v54 = vld [vmem:[#allocation5 + $0x2bc] ss:$12 sps:$4 sm:$0xff]   ;;  %v3980_v17 = vld [vmem:[#allocation5 + $0x34c] ss:$12 sps:$4 sm:$0xff]  }
  0xe8   : > { %1462 = vmatpush1.bf16.msra.mxu0 %v3883_v60  ;;  %1493 = vmatprep.mubr.bf16.mxu0 %v430_v14  ;;  %v424_v60 = vld [vmem:[%s4736_s20 + $0x58] sm:$0xff]  ;;  %v3975_v14 = vld [vmem:[#allocation5 + $0x334] ss:$12 sps:$4 sm:$0xff]  }
  0xe9   : > { %1463 = vmatprep.subr.bf16.mxu0 %v3890_v61  ;;  %3600 = vmatprep.subr.bf16.mxu1 %v3961_v18  ;;  %v3955_v61 = vld [vmem:[#allocation5 + $0x2d4] ss:$12 sps:$4 sm:$0xff]   ;;  %v4765_v63 = vpack.c.bf16 %v424_v60, %v417_v59  ;;  %v4055_v59 = vld [vmem:[#allocation7 + $0xc0] ss:$12 sps:$4 sm:$0xff]  }
  0xea   : > { %v3978_v18 = vld [vmem:[#allocation5 + $0x348] ss:$12 sps:$4 sm:$0xff]  }
  0xeb   : > { %3601 = vmatpush3.bf16.msra.mxu1 %v3962_v20  ;;  %v3983_v20 = vld [vmem:[#allocation5 + $0x360] ss:$12 sps:$4 sm:$0xff]  }
  0xec   : > { %1464 = vmatpush1.bf16.msra.mxu0 %v3888_v0  ;;  %3608 = vmatprep.subr.bf16.mxu1 %v3966_v24  ;;  %v4009_v0 = vld [vmem:[#allocation5 + $0x488] ss:$12 sps:$4 sm:$0xff]   ;;  %v3988_v24 = vld [vmem:[#allocation5 + $0x378] ss:$12 sps:$4 sm:$0xff]  }
  0xed   : > { %1465 = vmatprep.subr.bf16.mxu0 %v3895_v1  ;;  %v3960_v1 = vld [vmem:[#allocation5 + $0x2ec] ss:$12 sps:$4 sm:$0xff]   ;;  %v4060_v60 = vld [vmem:[#allocation7 + $0xdc] ss:$12 sps:$4 sm:$0xff]  }
  0xee   : > { %1664 = vmatmul.mubr.bf16.vlgmr.msra.gmra.mrb[4].mxu1 %v4758_v26 }
  0xef   : > { %3609 = vmatpush3.bf16.msra.mxu1 %v3967_v27  ;;  %1704 = vmatprep.mubr.bf16.mxu1 %v432_v49  ;;  %v4000_v27 = vld [vmem:[#allocation5 + $0x3ac] ss:$12 sps:$4 sm:$0xff]  }
  0xf0   : > { %1466 = vmatpush1.bf16.msra.mxu0 %v3893_v4  ;;  %3610 = vmatprep.subr.bf16.mxu1 %v3971_v29  ;;  %v419_v4 = vld [vmem:[%s4736_s20 + $0x30] sm:$0xff] }
  0xf1   : > { %1467 = vmatprep.subr.bf16.mxu0 %v3900_v5  ;;  %v426_v5 = vld [vmem:[%s4736_s20 + $0x68] sm:$0xff]  ;;  %v4005_v29 = vld [vmem:[#allocation5 + $0x3c4] ss:$12 sps:$4 sm:$0xff]  }
  0xf2   : > { %v4773_v10 = vpack.c.bf16 %v426_v5, %v419_v4  ;;  %v4067_v4 = vld [vmem:[#allocation7 + $0x120] ss:$12 sps:$4 sm:$0xff]   ;;  %v4072_v5 = vld [vmem:[#allocation7 + $0x13c] ss:$12 sps:$4 sm:$0xff]  }
  0xf3   : > { %3611 = vmatpush3.bf16.msra.mxu1 %v3972_v32  ;;  %v4006_v32 = vld [vmem:[#allocation5 + $0x3d8] ss:$12 sps:$4 sm:$0xff]  }
  0xf4   : > { %1468 = vmatpush1.bf16.msra.mxu0 %v3898_v8  ;;  %3612 = vmatprep.subr.bf16.mxu1 %v3976_v33  ;;  %v3963_v8 = vld [vmem:[#allocation5 + $0x300] ss:$12 sps:$4 sm:$0xff]  }
  0xf5   : > { %1469 = vmatprep.subr.bf16.mxu0 %v3905_v9  ;;  %v3970_v9 = vld [vmem:[#allocation5 + $0x31c] ss:$12 sps:$4 sm:$0xff]   ;;  %v4012_v33 = vld [vmem:[#allocation5 + $0x3f4] ss:$12 sps:$4 sm:$0xff]  }
  0xf7   : > { %3613 = vmatpush3.bf16.msra.mxu1 %v3977_v36  ;;  %v4013_v36 = vld [vmem:[#allocation5 + $0x408] ss:$12 sps:$4 sm:$0xff]  }
  0xf8   : > { %1470 = vmatpush1.bf16.msra.mxu0 %v3903_v15  ;;  %3614 = vmatprep.subr.bf16.mxu1 %v3981_v37  ;;  %v4034_v15 = vld [vmem:[#allocation7 + $0x18] ss:$12 sps:$4 sm:$0xff]  }
  0xf9   : > { %1471 = vmatprep.subr.bf16.mxu0 %v3910_v16  ;;  %v3973_v16 = vld [vmem:[#allocation5 + $0x330] ss:$12 sps:$4 sm:$0xff]  }
  0xfa   : > { %v4018_v37 = vld [vmem:[#allocation5 + $0x424] ss:$12 sps:$4 sm:$0xff]  }
  0xfb   : > { %3615 = vmatpush3.bf16.msra.mxu1 %v3982_v40  ;;  %v4019_v40 = vld [vmem:[#allocation5 + $0x438] ss:$12 sps:$4 sm:$0xff]  }
  0xfc   : > { %1472 = vmatpush1.bf16.msra.mxu0 %v3908_v19  ;;  %3616 = vmatprep.subr.bf16.mxu1 %v3986_v41  ;;  %v3985_v19 = vld [vmem:[#allocation5 + $0x364] ss:$12 sps:$4 sm:$0xff]   ;;  %v4040_v41 = vld [vmem:[#allocation7 + $0x48] ss:$12 sps:$4 sm:$0xff]  }
  0xfd   : > { %1473 = vmatprep.subr.bf16.mxu0 %v3915_v21  ;;  %v3990_v21 = vld [vmem:[#allocation5 + $0x37c] ss:$12 sps:$4 sm:$0xff]  }
  0xff   : > { %3617 = vmatpush3.bf16.msra.mxu1 %v3987_v44  ;;  %v4022_v44 = vld [vmem:[#allocation5 + $0x450] ss:$12 sps:$4 sm:$0xff]  }
 0x100   : > { %1474 = vmatpush1.bf16.msra.mxu0 %v3913_v25  ;;  %3618 = vmatprep.subr.bf16.mxu1 %v3991_v45  ;;  %v3995_v25 = vld [vmem:[#allocation5 + $0x394] ss:$12 sps:$4 sm:$0xff]   ;;  %v4027_v45 = vld [vmem:[#allocation5 + $0x46c] ss:$12 sps:$4 sm:$0xff]  }
 0x101   : > { %1475 = vmatprep.subr.bf16.mxu0 %v3920_v28  ;;  %v3998_v28 = vld [vmem:[#allocation5 + $0x3a8] ss:$12 sps:$4 sm:$0xff]  }
 0x103   : > { %3619 = vmatpush3.bf16.msra.mxu1 %v3992_v51  ;;  %v4045_v51 = vld [vmem:[#allocation7 + $0x64] ss:$12 sps:$4 sm:$0xff]  }
 0x104   : > { %1476 = vmatpush1.bf16.msra.mxu0 %v3918_v30  ;;  %3620 = vmatprep.subr.bf16.mxu1 %v3996_v52  ;;  %v4003_v30 = vld [vmem:[#allocation5 + $0x3c0] ss:$12 sps:$4 sm:$0xff]   ;;  %v4046_v52 = vld [vmem:[#allocation7 + $0x78] ss:$12 sps:$4 sm:$0xff]  }
 0x105   : > { %1477 = vmatprep.subr.bf16.mxu0 %v3925_v31  ;;  %v4008_v31 = vld [vmem:[#allocation5 + $0x3dc] ss:$12 sps:$4 sm:$0xff]  }
 0x107   : > { %3621 = vmatpush3.bf16.msra.mxu1 %v3997_v55  ;;  %v4051_v55 = vld [vmem:[#allocation7 + $0x94] ss:$12 sps:$4 sm:$0xff]  }
 0x108   : > { %1478 = vmatpush1.bf16.msra.mxu0 %v3923_v34  ;;  %3622 = vmatprep.subr.bf16.mxu1 %v4001_v56  ;;  %v4010_v34 = vld [vmem:[#allocation5 + $0x3f0] ss:$12 sps:$4 sm:$0xff]  }
 0x109   : > { %1479 = vmatprep.subr.bf16.mxu0 %v3930_v35  ;;  %v4015_v35 = vld [vmem:[#allocation5 + $0x40c] ss:$12 sps:$4 sm:$0xff]   ;;  %v4054_v56 = vld [vmem:[#allocation7 + $0xac] ss:$12 sps:$4 sm:$0xff]  }
 0x10b   : > { %3623 = vmatpush3.bf16.msra.mxu1 %v4002_v58  ;;  %v4057_v58 = vld [vmem:[#allocation7 + $0xc4] ss:$12 sps:$4 sm:$0xff]  }
 0x10c   : > { %1480 = vmatpush1.bf16.msra.mxu0 %v3928_v38  ;;  %3685 = vmatprep.subr.bf16.mxu1 %v4454_v2  ;;  %v4016_v38 = vld [vmem:[#allocation5 + $0x420] ss:$12 sps:$4 sm:$0xff]  }
 0x10d   : > { %1481 = vmatprep.subr.bf16.mxu0 %v3935_v39  ;;  %v4021_v39 = vld [vmem:[#allocation5 + $0x43c] ss:$12 sps:$4 sm:$0xff]  }
 0x10e   : > { %1705 = vmatmul.mubr.bf16.vlgmr.msra.gmra.mrb[8].mxu1 %v4765_v63 }
 0x10f   : > { %3686 = vmatpush3.bf16.msra.mxu1 %v4009_v0  ;;  %3687 = vmatprep.mubr.msk.bf16.mxu1 %vm4455_vm0, %v4454_v2  ;;  %v4066_v0 = vld [vmem:[#allocation7 + $0x10c] ss:$12 sps:$4 sm:$0xff]  }
 0x110   : > { %1482 = vmatpush1.bf16.msra.mxu0 %v3933_v42  ;;  %2289 = vmatprep.subr.bf16.mxu1 %v4033_v6  ;;  %v4042_v42 = vld [vmem:[#allocation7 + $0x4c] ss:$12 sps:$4 sm:$0xff]  }
 0x111   : > { %1483 = vmatprep.subr.bf16.mxu0 %v3940_v43  ;;  %v4024_v43 = vld [vmem:[#allocation5 + $0x454] ss:$12 sps:$4 sm:$0xff]   ;;  %v4070_v6 = vld [vmem:[#allocation7 + $0x138] ss:$12 sps:$4 sm:$0xff]  }
 0x114   : > { %1484 = vmatpush1.bf16.msra.mxu0 %v3938_v48  ;;  %v4028_v48 = vld [vmem:[#allocation5 + $0x480] ss:$12 sps:$4 sm:$0xff]  }
 0x115   : > { %1485 = vmatprep.subr.bf16.mxu0 %v3945_v50  ;;  %v4043_v50 = vld [vmem:[#allocation7 + $0x60] ss:$12 sps:$4 sm:$0xff]  }
 0x116   : > { %3688 = vmatmul.mubr.msk.bf16.vlgmr.msra.gmra.mrb[12].mxu1 %vm1414_vm1, %v4773_v10 }
 0x117   : > { %2290 = vmatpush1.bf16.msra.mxu1 %v4031_v11 }
 0x118   : > { %1486 = vmatpush1.bf16.msra.mxu0 %v3943_v53  ;;  %2291 = vmatprep.subr.bf16.mxu1 %v4036_v12  ;;  %v4048_v53 = vld [vmem:[#allocation7 + $0x7c] ss:$12 sps:$4 sm:$0xff]  }
 0x119   : > { %1487 = vmatprep.subr.bf16.mxu0 %v3950_v54  ;;  %v4049_v54 = vld [vmem:[#allocation7 + $0x90] ss:$12 sps:$4 sm:$0xff]  }
 0x11b   : > { %2292 = vmatpush1.bf16.msra.mxu1 %v4034_v15  ;;  %v4078_v15 = vld [vmem:[#allocation7 + $0x16c] ss:$12 sps:$4 sm:$0xff]  }
 0x11c   : > { %1488 = vmatpush1.bf16.msra.mxu0 %v3948_v57  ;;  %2293 = vmatprep.subr.bf16.mxu1 %v4039_v23  ;;  %v4052_v57 = vld [vmem:[#allocation7 + $0xa8] ss:$12 sps:$4 sm:$0xff]  }
 0x11d   : > { %1489 = vmatprep.subr.bf16.mxu0 %v3955_v61  ;;  %v4058_v61 = vld [vmem:[#allocation7 + $0xd8] ss:$12 sps:$4 sm:$0xff]  }
 0x11f   : > { %2294 = vmatpush1.bf16.msra.mxu1 %v4037_v22 }
 0x120   : > { %1490 = vmatpush1.bf16.msra.mxu0 %v3953_v62  ;;  %2295 = vmatprep.subr.bf16.mxu1 %v4042_v42  ;;  %v4063_v62 = vld [vmem:[#allocation7 + $0xf4] ss:$12 sps:$4 sm:$0xff]   ;;  %v4129_v42 = vld [vmem:[#allocation8 + $0x4] ss:$8 sps:$4 sm:$0xff]  }
 0x121   : > { %1491 = vmatprep.subr.bf16.mxu0 %v3960_v1  ;;  %v4064_v1 = vld [vmem:[#allocation7 + $0x108] ss:$12 sps:$4 sm:$0xff]  }
 0x123   : > { %2296 = vmatpush1.bf16.msra.mxu1 %v4040_v41  ;;  %v4127_v41 = vld [vmem:[#allocation8] ss:$8 sps:$4 sm:$0xff]  }
 0x124   : > { %1492 = vmatpush1.bf16.msra.mxu0 %v3958_v3  ;;  %2297 = vmatprep.subr.bf16.mxu1 %v4045_v51  ;;  %v4069_v3 = vld [vmem:[#allocation7 + $0x124] ss:$12 sps:$4 sm:$0xff]  }
 0x125   : > { %1504 = vmatprep.subr.bf16.mxu0 %v3965_v7 }
 0x127   : > { %1494 = vmatmul.mubr.bf16.vlgmr.msra.gmra.mrb[0].mxu0 %v4758_v26  ;;  %v3993_v26 = vld [vmem:[#allocation5 + $0x390] ss:$12 sps:$4 sm:$0xff]   ;;  %2298 = vmatpush1.bf16.msra.mxu1 %v4043_v50  ;;  %v4133_v50 = vld [vmem:[#allocation8 + $0x20] ss:$8 sps:$4 sm:$0xff]  }
 0x128   : > { %1505 = vmatpush1.bf16.msra.mxu0 %v3963_v8  ;;  %1536 = vmatprep.mubr.bf16.mxu0 %v432_v49  ;;  %v4456_v49 = vmov 0  }
 0x129   : > { %1506 = vmatprep.subr.bf16.mxu0 %v3970_v9  ;;  %2299 = vmatprep.subr.bf16.mxu1 %v4048_v53  ;;  %v4138_v53 = vld [vmem:[#allocation8 + $0x34] ss:$8 sps:$4 sm:$0xff]  }
 0x12b   : > { %2300 = vmatpush1.bf16.msra.mxu1 %v4046_v52 }
 0x12c   : > { %1507 = vmatpush1.bf16.msra.mxu0 %v3968_v13  ;;  %2301 = vmatprep.subr.bf16.mxu1 %v4051_v55  ;;  %v4075_v13 = vld [vmem:[#allocation7 + $0x154] ss:$12 sps:$4 sm:$0xff]  }
 0x12d   : > { %1508 = vmatprep.subr.bf16.mxu0 %v3975_v14  ;;  %v4073_v14 = vld [vmem:[#allocation7 + $0x150] ss:$12 sps:$4 sm:$0xff]  }
 0x12f   : > { %2302 = vmatpush1.bf16.msra.mxu1 %v4049_v54  ;;  %v3418_v54 = vld.sshfl [vmem:[%s4908_s2] sm:$0x13 pattern:$0x75316420] }
 0x130   : > { %1509 = vmatpush1.bf16.msra.mxu0 %v3973_v16  ;;  %2303 = vmatprep.subr.bf16.mxu1 %v4054_v56  ;;  %v4076_v16 = vld [vmem:[#allocation7 + $0x168] ss:$12 sps:$4 sm:$0xff]   ;;  %v1766_v55 = vcombine.high %v3418_v54, %v3418_v54  ;;  %v4136_v56 = vld [vmem:[#allocation8 + $0x30] ss:$8 sps:$4 sm:$0xff]  }
 0x131   : > { %1510 = vmatprep.subr.bf16.mxu0 %v3980_v17  ;;  %v4081_v17 = vld [vmem:[#allocation7 + $0x184] ss:$12 sps:$4 sm:$0xff]  }
 0x133   : > { %2304 = vmatpush1.bf16.msra.mxu1 %v4052_v57 }
 0x134   : > { %1511 = vmatpush1.bf16.msra.mxu0 %v3978_v18  ;;  %2305 = vmatprep.subr.bf16.mxu1 %v4057_v58  ;;  %v4141_v58 = vld [vmem:[#allocation8 + $0x44] ss:$8 sps:$4 sm:$0xff]  }
 0x135   : > { %1512 = vmatprep.subr.bf16.mxu0 %v3985_v19 }
 0x137   : > { %2306 = vmatpush1.bf16.msra.mxu1 %v4055_v59 }
 0x138   : > { %1513 = vmatpush1.bf16.msra.mxu0 %v3983_v20  ;;  %2307 = vmatprep.subr.bf16.mxu1 %v4060_v60  ;;  %v4139_v60 = vld [vmem:[#allocation8 + $0x40] ss:$8 sps:$4 sm:$0xff]  }
 0x139   : > { %1514 = vmatprep.subr.bf16.mxu0 %v3990_v21 }
 0x13b   : > { %2308 = vmatpush1.bf16.msra.mxu1 %v4058_v61 }
 0x13c   : > { %1515 = vmatpush1.bf16.msra.mxu0 %v3988_v24  ;;  %2309 = vmatprep.subr.bf16.mxu1 %v4063_v62  ;;  %v4144_v62 = vld [vmem:[#allocation8 + $0x54] ss:$8 sps:$4 sm:$0xff]  }
 0x13d   : > { %1516 = vmatprep.subr.bf16.mxu0 %v3995_v25 }
 0x140   : > { %1517 = vmatpush1.bf16.msra.mxu0 %v3993_v26 }
 0x141   : > { %1518 = vmatprep.subr.bf16.mxu0 %v4000_v27 }
 0x144   : > { %1519 = vmatpush1.bf16.msra.mxu0 %v3998_v28 }
 0x145   : > { %1520 = vmatprep.subr.bf16.mxu0 %v4005_v29 }
 0x148   : > { %1521 = vmatpush1.bf16.msra.mxu0 %v4003_v30 }
 0x149   : > { %1522 = vmatprep.subr.bf16.mxu0 %v4008_v31 }
 0x14c   : > { %1523 = vmatpush1.bf16.msra.mxu0 %v4006_v32 }
 0x14d   : > { %1524 = vmatprep.subr.bf16.mxu0 %v4012_v33 }
 0x150   : > { %1525 = vmatpush1.bf16.msra.mxu0 %v4010_v34 }
 0x151   : > { %1526 = vmatprep.subr.bf16.mxu0 %v4015_v35 }
 0x154   : > { %1527 = vmatpush1.bf16.msra.mxu0 %v4013_v36 }
 0x155   : > { %1528 = vmatprep.subr.bf16.mxu0 %v4018_v37 }
 0x158   : > { %1529 = vmatpush1.bf16.msra.mxu0 %v4016_v38 }
 0x159   : > { %1530 = vmatprep.subr.bf16.mxu0 %v4021_v39 }
 0x15c   : > { %1531 = vmatpush1.bf16.msra.mxu0 %v4019_v40 }
 0x15d   : > { %1532 = vmatprep.subr.bf16.mxu0 %v4024_v43  ;;  %v4132_v43 = vld [vmem:[#allocation8 + $0x14] ss:$8 sps:$4 sm:$0xff]  }
 0x160   : > { %1533 = vmatpush1.bf16.msra.mxu0 %v4022_v44  ;;  %v4130_v44 = vld [vmem:[#allocation8 + $0x10] ss:$8 sps:$4 sm:$0xff]  }
 0x161   : > { %1534 = vmatprep.subr.bf16.mxu0 %v4027_v45  ;;  %v4457_v45 = vmov 1966171168  }
 0x164   : > { %1535 = vmatpush1.bf16.msra.mxu0 %v4025_v46  ;;  %v1768_v46 = vunpack.c.l.s4 %v4457_v45  ;;  %v4094_v45 = vld [vmem:[#allocation7 + $0x1f8] ss:$12 sps:$4 sm:$0xff]  }
 0x165   : > { %1547 = vmatprep.subr.bf16.mxu0 %v4030_v47  ;;  %v1770_v47 = vlaneseq }
 0x166   : > { %v1769_v51 = vunpack.c.0.s8 %v1768_v46 }
 0x167   : > { %1537 = vmatmul.mubr.bf16.vlgmr.msra.gmra.mrb[0].mxu0 %v4765_v63  ;;  %v4061_v63 = vld [vmem:[#allocation7 + $0xf0] ss:$12 sps:$4 sm:$0xff]   ;;  %v1771_v52 = vshrl.u32 %v1770_v47, 7  ;;  %v4099_v47 = vld [vmem:[#allocation7 + $0x214] ss:$12 sps:$4 sm:$0xff]  }
 0x168   : > { %1548 = vmatpush1.bf16.msra.mxu0 %v4028_v48  ;;  %1579 = vmatprep.mubr.bf16.mxu0 %v4456_v49  ;;  %v4135_v48 = vld [vmem:[#allocation8 + $0x24] ss:$8 sps:$4 sm:$0xff]  }
 0x169   : > { %2310 = vmatpush1.bf16.msra.mxu1 %v4061_v63  ;;  %2800 = vmatprep.subr.bf16.mxu0 %v4129_v42  ;;  %v4791_v57 = vsub.s32 %v1769_v51, %v1771_v52  ;;  %v4096_v42 = vld [vmem:[#allocation7 + $0x1fc] ss:$12 sps:$4 sm:$0xff]  }
 0x16a   : > { %2311 = vmatprep.subr.bf16.mxu1 %v4066_v0 }
 0x16b   : > { %v1780_v59 = vrot.slane %v1766_v55, %v4791_v57  ;;  %v4795_v61 = vrot.slane %v3418_v54, %v4791_v57  ;;  %v4103_v55 = vld [vmem:[#allocation7 + $0xc8] ss:$12 sps:$4 sm:$0xff]  }
 0x16d   : > { %2312 = vmatpush1.bf16.msra.mxu1 %v4064_v1  ;;  %v1783_v63 = vpack.i.b16 %v4795_v61, %v4795_v61  ;;  %v1790_v0 = vpack.i.b16 %v1780_v59, %v1780_v59  ;;  %v4142_v1 = vld [vmem:[#allocation8 + $0x50] ss:$8 sps:$4 sm:$0xff]   ;;  %v4105_v59 = vld [vmem:[#allocation7 + $0xe0] ss:$12 sps:$4 sm:$0xff]  }
 0x16e   : > { %2313 = vmatprep.subr.bf16.mxu1 %v4069_v3  ;;  %v4799_v3 = vsub.s32 0, %v1771_v52  ;;  %v4102_v52 = vld [vmem:[#allocation7 + $0x22c] ss:$12 sps:$4 sm:$0xff]  }
 0x171   : > { %2314 = vmatpush1.bf16.msra.mxu1 %v4067_v4  ;;  %v4147_v4 = vld [vmem:[#allocation8 + $0x64] ss:$8 sps:$4 sm:$0xff]  }
 0x172   : > { %2315 = vmatprep.subr.bf16.mxu1 %v4072_v5 }
 0x173   : > { %3416 = vmatmul.mubr.msk.bf16.vlgmr.msra.gmra.mrb[0].mxu0 %vm1414_vm1, %v4773_v10 }
 0x174   : > { %2801 = vmatpush1.bf16.msra.mxu0 %v4127_v41  ;;  %v1781_v41 = vcombine.high %v4795_v61, %v4795_v61  ;;  %v4107_v61 = vld [vmem:[#allocation7 + $0xf8] ss:$12 sps:$4 sm:$0xff]  }
 0x175   : > { %2316 = vmatpush1.bf16.msra.mxu1 %v4070_v6  ;;  %2802 = vmatprep.subr.bf16.mxu0 %v4132_v43  ;;  %v4163_v43 = vld [vmem:[#allocation8 + $0xc0] ss:$8 sps:$4 sm:$0xff]  }
 0x176   : > { %2317 = vmatprep.subr.bf16.mxu1 %v4075_v13  ;;  %v4150_v13 = vld [vmem:[#allocation8 + $0x74] ss:$8 sps:$4 sm:$0xff]   ;;  %v1797_v46 = vpack.i.b16 %v1781_v41, %v1781_v41 }
 0x178   : > { %2803 = vmatpush1.bf16.msra.mxu0 %v4130_v44  ;;  %v4168_v44 = vld [vmem:[#allocation8 + $0xd4] ss:$8 sps:$4 sm:$0xff]   ;;  %v1802_v51 = vrot.slane %v1797_v46, %v4799_v3 }
 0x179   : > { %2318 = vmatpush1.bf16.msra.mxu1 %v4073_v14  ;;  %2804 = vmatprep.subr.bf16.mxu0 %v4135_v48  ;;  %v4166_v48 = vld [vmem:[#allocation8 + $0xd0] ss:$8 sps:$4 sm:$0xff]  }
 0x17a   : > { %2319 = vmatprep.subr.bf16.mxu1 %v4078_v15 }
 0x17c   : > { %2805 = vmatpush1.bf16.msra.mxu0 %v4133_v50  ;;  %v4097_v50 = vld [vmem:[#allocation7 + $0x210] ss:$12 sps:$4 sm:$0xff]  }
 0x17d   : > { %2320 = vmatpush1.bf16.msra.mxu1 %v4076_v16  ;;  %2806 = vmatprep.subr.bf16.mxu0 %v4138_v53  ;;  %v4100_v53 = vld [vmem:[#allocation7 + $0x228] ss:$12 sps:$4 sm:$0xff]  }
 0x17e   : > { %2332 = vmatprep.subr.bf16.mxu1 %v4081_v17  ;;  %v4148_v17 = vld [vmem:[#allocation8 + $0x70] ss:$8 sps:$4 sm:$0xff]  }
 0x180   : > { %2807 = vmatpush1.bf16.msra.mxu0 %v4136_v56  ;;  %v4104_v56 = vld [vmem:[#allocation7 + $0x8] ss:$12 sps:$4 sm:$0xff]  }
 0x181   : > { %2808 = vmatprep.subr.bf16.mxu0 %v4141_v58 }
 0x184   : > { %2809 = vmatpush1.bf16.msra.mxu0 %v4139_v60  ;;  %v4106_v60 = vld [vmem:[#allocation7 + $0x20] ss:$12 sps:$4 sm:$0xff]  }
 0x185   : > { %2810 = vmatprep.subr.bf16.mxu0 %v4144_v62  ;;  %v4108_v62 = vld [vmem:[#allocation7 + $0x38] ss:$12 sps:$4 sm:$0xff]  }
 0x188   : > { %2811 = vmatpush1.bf16.msra.mxu0 %v4142_v1  ;;  %v4114_v1 = vld [vmem:[#allocation7 + $0x80] ss:$12 sps:$4 sm:$0xff]  }
 0x189   : > { %2812 = vmatprep.subr.bf16.mxu0 %v4147_v4  ;;  %v4115_v4 = vld [vmem:[#allocation7 + $0x158] ss:$12 sps:$4 sm:$0xff]  }
 0x1a1   : > { %v3580_v7 = vpop.f32.mrb[0].mxu1 }
 0x1a2   : > { %v3581_v8 = vpop.f32.mrb[1].mxu1 }
 0x1a3   : > { %v3582_v9 = vadd.f32 %v3581_v8, %v3580_v7  ;;  %v3583_v10 = vpop.f32.mrb[2].mxu1  ;;  %v1788_v7 = vrot.slane %v1783_v63, %v4799_v3  ;;  %v4112_v63 = vld [vmem:[#allocation7 + $0x68] ss:$12 sps:$4 sm:$0xff]  }
 0x1a4   : > { %v3584_v11 = vpop.f32.mrb[3].mxu1 }
 0x1a5   : > { %v3585_v12 = vadd.f32 %v3584_v11, %v3583_v10  ;;  %v4145_v10 = vld [vmem:[#allocation8 + $0x60] ss:$8 sps:$4 sm:$0xff]  }
 0x1a6   : > { %2813 = vmatpush1.bf16.msra.mxu0 %v4145_v10  ;;  %v4121_v10 = vld [vmem:[#allocation7 + $0x1b8] ss:$12 sps:$4 sm:$0xff]  }
 0x1a7   : > { %2814 = vmatprep.subr.bf16.mxu0 %v4150_v13  ;;  %v4124_v13 = vld [vmem:[#allocation7 + $0x200] ss:$12 sps:$4 sm:$0xff]  }
 0x1aa   : > { %2815 = vmatpush1.bf16.msra.mxu0 %v4148_v17  ;;  %v4169_v17 = vld [vmem:[#allocation8 + $0xe0] ss:$8 sps:$4 sm:$0xff]  }
 0x1c1   : > { %v3602_v18 = vpop.f32.mrb[4].mxu1 }
 0x1c2   : > { %v3603_v19 = vpop.f32.mrb[5].mxu1 }
 0x1c3   : > { %v3604_v20 = vadd.f32 %v3603_v19, %v3602_v18  ;;  %v3605_v21 = vpop.f32.mrb[6].mxu1  ;;  %v4153_v18 = vld [vmem:[#allocation8 + $0x84] ss:$8 sps:$4 sm:$0xff]  }
 0x1c4   : > { %v3606_v22 = vpop.f32.mrb[7].mxu1  ;;  %2816 = vmatprep.subr.bf16.mxu0 %v4153_v18  ;;  %v4174_v18 = vld [vmem:[#allocation8 + $0xf4] ss:$8 sps:$4 sm:$0xff]  }
 0x1c5   : > { %v1666_v23 = vadd.f32 %v3604_v20, %v3582_v9  ;;  %v3607_v24 = vadd.f32 %v3606_v22, %v3605_v21  ;;  %v1795_v9 = vrot.slane %v1790_v0, %v4799_v3  ;;  %v4079_v20 = vld [vmem:[#allocation7 + $0x180] ss:$12 sps:$4 sm:$0xff]   ;;  %v4084_v22 = vld [vmem:[#allocation7 + $0x19c] ss:$12 sps:$4 sm:$0xff]  }
 0x1c6   : > { %v4113_v0 = vld [vmem:[#allocation7 + $0x140] ss:$12 sps:$4 sm:$0xff]  }
 0x1c7   : > { %v1669_v25 = vadd.f32 %v3607_v24, %v3585_v12  ;;  %v4156_v24 = vld [vmem:[#allocation8 + $0x94] ss:$8 sps:$4 sm:$0xff]  }
 0x1e1   : > { %v3624_v26 = vpop.f32.mrb[8].mxu1 }
 0x1e2   : > { %v3625_v27 = vpop.f32.mrb[9].mxu1 }
 0x1e3   : > { %v3626_v28 = vadd.f32 %v3625_v27, %v3624_v26  ;;  %v3627_v29 = vpop.f32.mrb[10].mxu1  ;;  %v4087_v26 = vld [vmem:[#allocation7 + $0x1b4] ss:$12 sps:$4 sm:$0xff]   ;;  %v4154_v27 = vld [vmem:[#allocation8 + $0x90] ss:$8 sps:$4 sm:$0xff]  }
 0x1e4   : > { %v3628_v30 = vpop.f32.mrb[11].mxu1 }
 0x1e5   : > { %v3629_v31 = vadd.f32 %v3628_v30, %v3627_v29  ;;  %v1707_v32 = vadd.f32 %v3626_v28, %v1666_v23  ;;  %v4151_v23 = vld [vmem:[#allocation8 + $0x80] ss:$8 sps:$4 sm:$0xff]   ;;  %v4159_v28 = vld [vmem:[#allocation8 + $0xa4] ss:$8 sps:$4 sm:$0xff]   ;;  %v4085_v29 = vld [vmem:[#allocation7 + $0x1b0] ss:$12 sps:$4 sm:$0xff]  }
 0x1e6   : > { %2817 = vmatpush1.bf16.msra.mxu0 %v4151_v23  ;;  %v4090_v30 = vld [vmem:[#allocation7 + $0x1cc] ss:$12 sps:$4 sm:$0xff]  }
 0x1e7   : > { %v1710_v33 = vadd.f32 %v3629_v31, %v1669_v25  ;;  %v4082_v25 = vld [vmem:[#allocation7 + $0x198] ss:$12 sps:$4 sm:$0xff]   ;;  %2818 = vmatprep.subr.bf16.mxu0 %v4156_v24  ;;  %v4157_v31 = vld [vmem:[#allocation8 + $0xa0] ss:$8 sps:$4 sm:$0xff]  }
 0x1e8   : > { %v4201_v23 = vld [vmem:[#allocation10 + $0x48] sm:$0xff]  }
 0x1e9   : > { %v1747_v34 = vpop.f32.mrb[12].mxu1  ;;  %v4202_v24 = vld [vmem:[#allocation10 + $0x8] sm:$0xff]  }
 0x1ea   : > { %v4782_v35 = vadd.f32 %v1747_v34, %v1707_v32  ;;  %v3689_v36 = vpop.f32.mrb[13].mxu1  ;;  %2819 = vmatpush1.bf16.msra.mxu0 %v4154_v27  ;;  %v4162_v32 = vld [vmem:[#allocation8 + $0xb4] ss:$8 sps:$4 sm:$0xff]   ;;  %v4093_v34 = vld [vmem:[#allocation7 + $0x1e4] ss:$12 sps:$4 sm:$0xff]  }
 0x1eb   : > { %v1750_v37 = vpop.f32.mrb[14].mxu1  ;;  %2820 = vmatprep.subr.bf16.mxu0 %v4159_v28  ;;  %v4160_v36 = vld [vmem:[#allocation8 + $0xb0] ss:$8 sps:$4 sm:$0xff]   ;;  %v4207_v28 = vld [vmem:[#allocation10 + $0x60] sm:$0xff]  }
 0x1ec   : > { %v4784_v38 = vadd.f32 %v1750_v37, %v1710_v33  ;;  %v3690_v39 = vpop.f32.mrb[15].mxu1  ;;  %v4088_v33 = vld [vmem:[#allocation7 + $0x1c8] ss:$12 sps:$4 sm:$0xff]   ;;  %v4165_v37 = vld [vmem:[#allocation8 + $0xc4] ss:$8 sps:$4 sm:$0xff]   ;;  %v4206_v27 = vld [vmem:[#allocation10 + $0x18] sm:$0xff]  }
 0x1ed   : > { %v4091_v39 = vld [vmem:[#allocation7 + $0x1e0] ss:$12 sps:$4 sm:$0xff]  }
 0x1ee   : > { %v1756_v40 = vpack.c.bf16 %v4784_v38, %v4782_v35  ;;  %2821 = vmatpush1.bf16.msra.mxu0 %v4157_v31  ;;  %v4109_v35 = vld [vmem:[#allocation7 + $0x110] ss:$12 sps:$4 sm:$0xff]   ;;  %v3491_v31 = vld.sshfl [vmem:[%s4910_s4] sm:$0x13 pattern:$0x75316420] }
 0x1ef   : > { %2822 = vmatprep.subr.bf16.mxu0 %v4162_v32  ;;  %v4110_v38 = vld [vmem:[#allocation7 + $0x50] ss:$12 sps:$4 sm:$0xff]   ;;  %v2469_v32 = vcombine.high %v3491_v31, %v3491_v31 }
 0x1f0   : > { %v1805_v54 = vadd.bf16 %v1802_v51, %v1756_v40  ;;  %v4111_v40 = vld [vmem:[#allocation7 + $0x128] ss:$12 sps:$4 sm:$0xff]  }
 0x1f2   : > { %2823 = vmatpush1.bf16.msra.mxu0 %v4160_v36  ;;  %v1808_v58 = vmax.bf16 %v4456_v49, %v1805_v54  ;;  %v4180_v54 = vld [vmem:[#allocation8 + $0x114] ss:$8 sps:$4 sm:$0xff]  }
 0x1f3   : > { %2824 = vmatprep.subr.bf16.mxu0 %v4165_v37 }
 0x1f6   : > { %2825 = vmatpush1.bf16.msra.mxu0 %v4163_v43 }
 0x1f7   : > { %2826 = vmatprep.subr.bf16.mxu0 %v4168_v44 }
 0x1fa   : > { %2827 = vmatpush1.bf16.msra.mxu0 %v4166_v48 }
 0x246   : > { %v1581_v5 = vpop.f32.mrb[0].mxu0 }
 0x247   : > { %v1583_v6 = vpop.f32.mrb[1].mxu0 }
 0x248   : > { %v1585_v8 = vpop.f32.mrb[2].mxu0 }
 0x249   : > { %v1754_v11 = vpack.c.bf16 %v1585_v8, %v1581_v5  ;;  %v1587_v12 = vpop.f32.mrb[3].mxu0  ;;  %v4116_v5 = vld [vmem:[#allocation7 + $0x98] ss:$12 sps:$4 sm:$0xff]   ;;  %v4119_v8 = vld [vmem:[#allocation7 + $0x188] ss:$12 sps:$4 sm:$0xff]  }
 0x24a   : > { %v1755_v14 = vpack.c.bf16 %v1587_v12, %v1583_v6  ;;  %v4117_v6 = vld [vmem:[#allocation7 + $0x170] ss:$12 sps:$4 sm:$0xff]   ;;  %v4123_v12 = vld [vmem:[#allocation7 + $0x1e8] ss:$12 sps:$4 sm:$0xff]  }
 0x24b   : > { %v1803_v15 = vadd.bf16 %v1788_v7, %v1754_v11  ;;  %v4118_v7 = vld [vmem:[#allocation7 + $0xb0] ss:$12 sps:$4 sm:$0xff]  }
 0x24c   : > { %v1804_v16 = vadd.bf16 %v1795_v9, %v1755_v14  ;;  %v4120_v9 = vld [vmem:[#allocation7 + $0x1a0] ss:$12 sps:$4 sm:$0xff]   ;;  %v4122_v11 = vld [vmem:[#allocation7 + $0x1d0] ss:$12 sps:$4 sm:$0xff]   ;;  %v4125_v14 = vld [vmem:[#allocation7 + $0x218] ss:$12 sps:$4 sm:$0xff]  }
 0x24d   : > { %v4807_v21 = vmax.bf16 %v4456_v49, %v1803_v15  ;;  %v4126_v15 = vld [vmem:[#allocation7 + $0x230] ss:$12 sps:$4 sm:$0xff]  }
 0x24e   : > { %v4804_v19 = vmax.bf16 %v4456_v49, %v1804_v16  ;;  %v4171_v16 = vld [vmem:[#allocation8 + $0xe4] ss:$8 sps:$4 sm:$0xff]  }
 0x24f   : > { %2828 = vmatprep.subr.bf16.mxu0 %v4171_v16 }
 0x250   : > { %2321 = vmatprep.mubr.bf16.mxu1 %v4804_v19  ;;  %2829 = vmatpush1.bf16.msra.mxu0 %v4169_v17 }
 0x251   : > { %2322 = vmatmul.mubr.bf16.vlgmr.msra.gmra.mrb[16].mxu1 %v4807_v21  ;;  %2830 = vmatprep.subr.bf16.mxu0 %v4174_v18 }
 0x252   : > { %2333 = vmatpush1.bf16.msra.mxu1 %v4079_v20  ;;  %2364 = vmatprep.mubr.bf16.mxu1 %v4456_v49  ;;  %v4177_v20 = vld [vmem:[#allocation8 + $0x104] ss:$8 sps:$4 sm:$0xff]  }
 0x253   : > { %2334 = vmatprep.subr.bf16.mxu1 %v4084_v22  ;;  %v4200_v22 = vld [vmem:[#allocation10] sm:$0xff]  }
 0x256   : > { %2335 = vmatpush1.bf16.msra.mxu1 %v4082_v25  ;;  %v4204_v25 = vld [vmem:[#allocation10 + $0x10] sm:$0xff]  }
 0x257   : > { %2336 = vmatprep.subr.bf16.mxu1 %v4087_v26  ;;  %v4205_v26 = vld [vmem:[#allocation10 + $0x58] sm:$0xff]  }
 0x25a   : > { %2337 = vmatpush1.bf16.msra.mxu1 %v4085_v29  ;;  %v4208_v29 = vld [vmem:[#allocation10 + $0x20] sm:$0xff]  }
 0x25b   : > { %2338 = vmatprep.subr.bf16.mxu1 %v4090_v30  ;;  %v4209_v30 = vld [vmem:[#allocation10 + $0x68] sm:$0xff]  }
 0x25e   : > { %2339 = vmatpush1.bf16.msra.mxu1 %v4088_v33  ;;  %v2476_v33 = vrot.slane %v3491_v31, %v4791_v57 }
 0x25f   : > { %2340 = vmatprep.subr.bf16.mxu1 %v4093_v34  ;;  %v2483_v34 = vrot.slane %v2469_v32, %v4791_v57 }
 0x260   : > { %v2486_v36 = vpack.i.b16 %v2476_v33, %v2476_v33 }
 0x261   : > { %v2493_v37 = vpack.i.b16 %v2483_v34, %v2483_v34 }
 0x262   : > { %2341 = vmatpush1.bf16.msra.mxu1 %v4091_v39 }
 0x263   : > { %2342 = vmatprep.subr.bf16.mxu1 %v4096_v42  ;;  %v2491_v42 = vrot.slane %v2486_v36, %v4799_v3  ;;  %v2498_v44 = vrot.slane %v2493_v37, %v4799_v3 }
 0x266   : > { %2343 = vmatpush1.bf16.msra.mxu1 %v4094_v45 }
 0x267   : > { %2344 = vmatprep.subr.bf16.mxu1 %v4099_v47 }
 0x26a   : > { %2345 = vmatpush1.bf16.msra.mxu1 %v4097_v50 }
 0x26b   : > { %2346 = vmatprep.subr.bf16.mxu1 %v4102_v52  ;;  %v4175_v52 = vld [vmem:[#allocation8 + $0x100] ss:$8 sps:$4 sm:$0xff]  }
 0x26e   : > { %2347 = vmatpush1.bf16.msra.mxu1 %v4100_v53 }
 0x26f   : > { %3632 = vmatprep.subr.bf16.mxu1 %v4103_v55  ;;  %v4178_v55 = vld [vmem:[#allocation8 + $0x110] ss:$8 sps:$4 sm:$0xff]  }
 0x271   : > { %2365 = vmatmul.mubr.bf16.vlgmr.msra.gmra.mrb[16].mxu1 %v1808_v58 }
 0x272   : > { %3633 = vmatpush3.bf16.msra.mxu1 %v4104_v56  ;;  %2407 = vmatprep.mubr.bf16.mxu1 %v4804_v19  ;;  %v4172_v19 = vld [vmem:[#allocation8 + $0xf0] ss:$8 sps:$4 sm:$0xff]   ;;  %v4183_v56 = vld [vmem:[#allocation8 + $0x124] ss:$8 sps:$4 sm:$0xff]  }
 0x273   : > { %3634 = vmatprep.subr.bf16.mxu1 %v4105_v59  ;;  %2831 = vmatpush1.bf16.msra.mxu0 %v4172_v19  ;;  %v4186_v59 = vld [vmem:[#allocation8 + $0x134] ss:$8 sps:$4 sm:$0xff]  }
 0x274   : > { %2843 = vmatprep.subr.bf16.mxu0 %v4177_v20 }
 0x276   : > { %3635 = vmatpush3.bf16.msra.mxu1 %v4106_v60  ;;  %v4184_v60 = vld [vmem:[#allocation8 + $0x130] ss:$8 sps:$4 sm:$0xff]  }
 0x277   : > { %3636 = vmatprep.subr.bf16.mxu1 %v4107_v61  ;;  %v4189_v61 = vld [vmem:[#allocation8 + $0x144] ss:$8 sps:$4 sm:$0xff]  }
 0x27a   : > { %3637 = vmatpush3.bf16.msra.mxu1 %v4108_v62  ;;  %v4187_v62 = vld [vmem:[#allocation8 + $0x140] ss:$8 sps:$4 sm:$0xff]  }
 0x27b   : > { %3638 = vmatprep.subr.bf16.mxu1 %v4109_v35  ;;  %v4192_v35 = vld [vmem:[#allocation8 + $0x154] ss:$8 sps:$4 sm:$0xff]  }
 0x27e   : > { %3639 = vmatpush3.bf16.msra.mxu1 %v4110_v38  ;;  %v4190_v38 = vld [vmem:[#allocation8 + $0x150] ss:$8 sps:$4 sm:$0xff]  }
 0x27f   : > { %3640 = vmatprep.subr.bf16.mxu1 %v4111_v40  ;;  %v4195_v40 = vld [vmem:[#allocation8 + $0x164] ss:$8 sps:$4 sm:$0xff]  }
 0x282   : > { %3641 = vmatpush3.bf16.msra.mxu1 %v4112_v63 }
 0x283   : > { %3642 = vmatprep.subr.bf16.mxu1 %v4113_v0  ;;  %v4193_v0 = vld [vmem:[#allocation8 + $0x160] ss:$8 sps:$4 sm:$0xff]  }
 0x286   : > { %3643 = vmatpush3.bf16.msra.mxu1 %v4114_v1 }
 0x287   : > { %3644 = vmatprep.subr.bf16.mxu1 %v4115_v4  ;;  %v4198_v4 = vld [vmem:[#allocation8 + $0x174] ss:$8 sps:$4 sm:$0xff]  }
 0x28a   : > { %3645 = vmatpush3.bf16.msra.mxu1 %v4116_v5 }
 0x28b   : > { %3646 = vmatprep.subr.bf16.mxu1 %v4117_v6 }
 0x28e   : > { %3647 = vmatpush3.bf16.msra.mxu1 %v4118_v7 }
 0x28f   : > { %3691 = vmatprep.subr.bf16.mxu1 %v4454_v2 }
 0x291   : > { %2408 = vmatmul.mubr.bf16.vlgmr.msra.gmra.mrb[20].mxu1 %v4807_v21  ;;  %v4199_v21 = vld [vmem:[#allocation10 + $0x40] sm:$0xff]  }
 0x292   : > { %3692 = vmatpush3.bf16.msra.mxu1 %v4119_v8  ;;  %3707 = vmatprep.mubr.msk.bf16.mxu1 %vm4455_vm0, %v4454_v2 }
 0x293   : > { %3693 = vmatprep.subr.bf16.mxu1 %v4454_v2 }
 0x296   : > { %3694 = vmatpush3.bf16.msra.mxu1 %v4120_v9  ;;  %v4196_v9 = vld [vmem:[#allocation8 + $0x170] ss:$8 sps:$4 sm:$0xff]  }
 0x297   : > { %3695 = vmatprep.subr.bf16.mxu1 %v4454_v2 }
 0x29a   : > { %3696 = vmatpush3.bf16.msra.mxu1 %v4121_v10  ;;  %v2484_v10 = vcombine.high %v2476_v33, %v2476_v33 }
 0x29b   : > { %3697 = vmatprep.subr.bf16.mxu1 %v4454_v2 }
 0x29e   : > { %3698 = vmatpush3.bf16.msra.mxu1 %v4122_v11  ;;  %v2500_v11 = vpack.i.b16 %v2484_v10, %v2484_v10 }
 0x29f   : > { %3699 = vmatprep.subr.bf16.mxu1 %v4454_v2 }
 0x2a0   : > { %v2505_v17 = vrot.slane %v2500_v11, %v4799_v3 }
 0x2a2   : > { %3700 = vmatpush3.bf16.msra.mxu1 %v4123_v12 }
 0x2a3   : > { %3701 = vmatprep.subr.bf16.mxu1 %v4454_v2 }
 0x2a6   : > { %3702 = vmatpush3.bf16.msra.mxu1 %v4124_v13 }
 0x2a7   : > { %3703 = vmatprep.subr.bf16.mxu1 %v4454_v2 }
 0x2aa   : > { %3704 = vmatpush3.bf16.msra.mxu1 %v4125_v14 }
 0x2ab   : > { %3705 = vmatprep.subr.bf16.mxu1 %v4454_v2  ;;  %v4203_v2 = vld [vmem:[#allocation10 + $0x50] sm:$0xff]  }
 0x2ae   : > { %3706 = vmatpush3.bf16.msra.mxu1 %v4126_v15 }
 0x2af   : > { %3663 = vmatprep.subr.bf16.mxu1 %v4199_v21 }
 0x2b1   : > { %3708 = vmatmul.mubr.bf16.vlgmr.msra.gmra.mrb[24].mxu1 %v1808_v58  ;;  %v4181_v58 = vld [vmem:[#allocation8 + $0x120] ss:$8 sps:$4 sm:$0xff]  }
 0x2b2   : > { %3664 = vmatpush3.bf16.msra.mxu1 %v4200_v22  ;;  %v4210_v22 = vld [vmem:[#allocation10 + $0x28] sm:$0xff]  }
 0x2b3   : > { %3665 = vmatprep.subr.bf16.mxu1 %v4201_v23  ;;  %v4211_v23 = vld [vmem:[#allocation10 + $0x70] sm:$0xff]  }
 0x2b6   : > { %3666 = vmatpush3.bf16.msra.mxu1 %v4202_v24  ;;  %v4212_v24 = vld [vmem:[#allocation10 + $0x30] sm:$0xff]  }
 0x2b7   : > { %3667 = vmatprep.subr.bf16.mxu1 %v4203_v2  ;;  %v4213_v2 = vld [vmem:[#allocation10 + $0x78] sm:$0xff]  }
 0x2ba   : > { %3668 = vmatpush3.bf16.msra.mxu1 %v4204_v25  ;;  %v4214_v25 = vld [vmem:[#allocation10 + $0x38] sm:$0xff]  }
 0x2bb   : > { %3669 = vmatprep.subr.bf16.mxu1 %v4205_v26  ;;  %v3540_v26 = vld.sshfl [vmem:[%s4912_s6] sm:$0x11 pattern:$0x75316420] }
 0x2be   : > { %3670 = vmatpush3.bf16.msra.mxu1 %v4206_v27  ;;  %v2897_v27 = vcombine.high %v3540_v26, %v3540_v26 }
 0x2bf   : > { %3671 = vmatprep.subr.bf16.mxu1 %v4207_v28  ;;  %v2904_v28 = vrot.slane %v3540_v26, %v4791_v57 }
 0x2c2   : > { %3672 = vmatpush3.bf16.msra.mxu1 %v4208_v29  ;;  %v2911_v29 = vrot.slane %v2897_v27, %v4791_v57 }
 0x2c3   : > { %3673 = vmatprep.subr.bf16.mxu1 %v4209_v30  ;;  %v2913_v30 = vpack.i.b16 %v2904_v28, %v2904_v28 }
 0x2c4   : > { %v2920_v31 = vpack.i.b16 %v2911_v29, %v2911_v29 }
 0x2c5   : > { %v2918_v34 = vrot.slane %v2913_v30, %v4799_v3 }
 0x2c6   : > { %3674 = vmatpush3.bf16.msra.mxu1 %v4210_v22  ;;  %v2925_v37 = vrot.slane %v2920_v31, %v4799_v3 }
 0x2c7   : > { %3675 = vmatprep.subr.bf16.mxu1 %v4211_v23 }
 0x2ca   : > { %3676 = vmatpush3.bf16.msra.mxu1 %v4212_v24 }
 0x2cb   : > { %3677 = vmatprep.subr.bf16.mxu1 %v4213_v2 }
 0x2ce   : > { %3678 = vmatpush3.bf16.msra.mxu1 %v4214_v25 }
 0x344   : > { %v2366_v39 = vpop.f32.mrb[16].mxu1 }
 0x345   : > { %v2368_v41 = vpop.f32.mrb[17].mxu1 }
 0x346   : > { %v2370_v43 = vpop.f32.mrb[18].mxu1 }
 0x347   : > { %v2457_v45 = vpack.c.bf16 %v2370_v43, %v2366_v39  ;;  %v2372_v46 = vpop.f32.mrb[19].mxu1 }
 0x348   : > { %v2458_v47 = vpack.c.bf16 %v2372_v46, %v2368_v41 }
 0x349   : > { %v2506_v48 = vadd.bf16 %v2491_v42, %v2457_v45 }
 0x34a   : > { %v2507_v50 = vadd.bf16 %v2498_v44, %v2458_v47 }
 0x34b   : > { %v2509_v53 = vmax.bf16 %v4456_v49, %v2506_v48  ;;  %v3541_v48 = vld [vmem:[%s4914_s8] ss:$0 sm:$0xff] }
 0x34c   : > { %v2510_v51 = vmax.bf16 %v4456_v49, %v2507_v50 }
 0x34e   : > { %2832 = vmatprep.mubr.bf16.mxu0 %v2510_v51 }
 0x34f   : > { %2833 = vmatmul.mubr.bf16.vlgmr.msra.gmra.mrb[4].mxu0 %v2509_v53 }
 0x350   : > { %2844 = vmatpush1.bf16.msra.mxu0 %v4175_v52  ;;  %2875 = vmatprep.mubr.bf16.mxu0 %v4456_v49 }
 0x351   : > { %2845 = vmatprep.subr.bf16.mxu0 %v4180_v54 }
 0x354   : > { %2846 = vmatpush1.bf16.msra.mxu0 %v4178_v55 }
 0x355   : > { %2847 = vmatprep.subr.bf16.mxu0 %v4183_v56 }
 0x358   : > { %2848 = vmatpush1.bf16.msra.mxu0 %v4181_v58 }
 0x359   : > { %2849 = vmatprep.subr.bf16.mxu0 %v4186_v59 }
 0x35c   : > { %2850 = vmatpush1.bf16.msra.mxu0 %v4184_v60 }
 0x35d   : > { %2851 = vmatprep.subr.bf16.mxu0 %v4189_v61 }
 0x360   : > { %2852 = vmatpush1.bf16.msra.mxu0 %v4187_v62 }
 0x361   : > { %2853 = vmatprep.subr.bf16.mxu0 %v4192_v35 }
 0x364   : > { %v3648_v63 = vpop.f32.mrb[20].mxu1  ;;  %2854 = vmatpush1.bf16.msra.mxu0 %v4190_v38 }
 0x365   : > { %v3649_v1 = vpop.f32.mrb[21].mxu1  ;;  %2855 = vmatprep.subr.bf16.mxu0 %v4195_v40 }
 0x366   : > { %v3650_v5 = vadd.f32 %v3649_v1, %v3648_v63  ;;  %v3651_v6 = vpop.f32.mrb[22].mxu1 }
 0x367   : > { %v3652_v7 = vpop.f32.mrb[23].mxu1 }
 0x368   : > { %v3653_v8 = vadd.f32 %v3652_v7, %v3651_v6  ;;  %2856 = vmatpush1.bf16.msra.mxu0 %v4193_v0 }
 0x369   : > { %2857 = vmatprep.subr.bf16.mxu0 %v4198_v4 }
 0x36c   : > { %2858 = vmatpush1.bf16.msra.mxu0 %v4196_v9 }
 0x384   : > { %v2450_v12 = vpop.f32.mrb[24].mxu1 }
 0x385   : > { %v2451_v13 = vadd.f32 %v3650_v5, %v2450_v12  ;;  %v3709_v14 = vpop.f32.mrb[25].mxu1 }
 0x386   : > { %v2453_v15 = vpop.f32.mrb[26].mxu1 }
 0x387   : > { %v2454_v16 = vadd.f32 %v3653_v8, %v2453_v15  ;;  %v3710_v18 = vpop.f32.mrb[27].mxu1 }
 0x389   : > { %v2459_v19 = vpack.c.bf16 %v2454_v16, %v2451_v13 }
 0x38b   : > { %v2508_v20 = vadd.bf16 %v2505_v17, %v2459_v19 }
 0x38d   : > { %v2511_v21 = vmax.bf16 %v4456_v49, %v2508_v20 }
 0x38f   : > { %2876 = vmatmul.mubr.bf16.vlgmr.msra.gmra.mrb[4].mxu0 %v2511_v21 }
 0x462   : > { %v2877_v32 = vpop.f32.mrb[4].mxu0 }
 0x463   : > { %v2879_v33 = vpop.f32.mrb[5].mxu0 }
 0x464   : > { %v2881_v36 = vpop.f32.mrb[6].mxu0 }
 0x465   : > { %v2886_v39 = vpack.c.bf16 %v2881_v36, %v2877_v32  ;;  %v2883_v41 = vpop.f32.mrb[7].mxu0 }
 0x466   : > { %v2887_v42 = vpack.c.bf16 %v2883_v41, %v2879_v33 }
 0x467   : > { %v2926_v43 = vadd.bf16 %v2918_v34, %v2886_v39 }
 0x468   : > { %v2927_v44 = vadd.bf16 %v2925_v37, %v2887_v42 }
 0x469   : > { %v2928_v46 = vmax.bf16 %v4456_v49, %v2926_v43 }
 0x46a   : > { %v2929_v45 = vmax.bf16 %v4456_v49, %v2927_v44 }
 0x46c   : > { %3097 = vmatprep.mubr.bf16.mxu1 %v2929_v45 }
 0x46d   : > { %3098 = vmatmul.mubr.bf16.vlgmr.msra.gmra.mrb[28].mxu1 %v2928_v46 }
 0x540   : > { %v3679_v57 = vpop.f32.mrb[28].mxu1 }
 0x541   : > { %v3680_v47 = vpop.f32.mrb[29].mxu1 }
 0x542   : > { %v3681_v50 = vadd.f32 %v3680_v47, %v3679_v57  ;;  %v3682_v51 = vpop.f32.mrb[30].mxu1 }
 0x543   : > { %v3683_v3 = vpop.f32.mrb[31].mxu1 }
 0x544   : > { %v3684_v52 = vadd.f32 %v3683_v3, %v3682_v51  ;;  %v3100_v53 = vadd.f32 %v3681_v50, %v3541_v48 }
 0x546   : > { %3106 = vmax.xlane.f32.xlu0 %v3100_v53  ;;  %v3103_v54 = vadd.f32 %v3684_v52, %v3541_v48 }
 0x54a   : > { %3108 = vmax.xlane.f32.xlu0 %v3103_v54 }
 0x5d3   : > { %v3107_v55 = vpop.xlane.xlu0 %3106 }
 0x5d4   : > { %v3110_v56 = vsub.f32 %v3100_v53, %v3107_v55 }
 0x5d6   : > { %v3112_v49 = vmul.f32 1.442695, %v3110_v56 }
 0x5d7   : > { %v3109_v58 = vpop.xlane.xlu0 %3108 }
 0x5d8   : > { %v3111_v59 = vsub.f32 %v3103_v54, %v3109_v58  ;;  %4215 = vpow2.f32 %v3112_v49 }
 0x5da   : > { %v3114_v60 = vmul.f32 1.442695, %v3111_v59 }
 0x5dc   : > { %4217 = vpow2.f32 %v3114_v60 }
 0x5e2   : > { %v4216_v61 = vpop.eup %4215 }
 0x5e3   : > { %3116 = vadd.xlane.f32.xlu1 %v4216_v61 }
 0x5e6   : > { %v4218_v62 = vpop.eup %4217 }
 0x5e7   : > { %3118 = vadd.xlane.f32.xlu1 %v4218_v62 }
 0x670   : > { %v3117_v35 = vpop.xlane.xlu1 %3116 }
 0x671   : > { %4219 = vlog2.f32 %v3117_v35 }
 0x674   : > { %v3119_v38 = vpop.xlane.xlu1 %3118 }
 0x675   : > { %4221 = vlog2.f32 %v3119_v38 }
 0x67b   : > { %v4220_v40 = vpop.eup %4219 }
 0x67c   : > { %v3121_v63 = vmul.f32 0.6931472, %v4220_v40 }
 0x67e   : > { %v3124_v0 = vsub.f32 %v3110_v56, %v3121_v63 }
 0x67f   : > { %v4222_v1 = vpop.eup %4221 }
 0x680   : > { %3126 = vst [vmem:[%s409_s23] sm:$0xff] %v3124_v0  ;;  %v3123_v4 = vmul.f32 0.6931472, %v4222_v1 }
 0x682   : > { %v3125_v5 = vsub.f32 %v3111_v59, %v3123_v4 }
 0x684   : > { %3127 = vst [vmem:[%s409_s23 + $0x8] sm:$0xff] %v3125_v5 }
 0x685   : > { %4378 = shalt.err (!%p4375_p13)
}
 0x686   : > { %s4379_s1 = scalar_lea.hbm %s4862_s15, 256  ;;  %s4383_s21 = scalar_lea.hbm %s4915_s9, 512 }
 0x687   : > { %p4380_p9 = scmp.ne.s32.totalorder %s4862_s15, %s4379_s1  ;;  %p4384_p6 = scmp.lt.u32.totalorder %s4862_s15, %s4915_s9 }
 0x688   : > { %p4385_p4 = scmp.lt.u32.totalorder %s4383_s21, %s4379_s1  ;;  %p4387_p10 = scmp.lt.u32.totalorder %s4379_s1, %s4862_s15 }
 0x689   : > { %p4381_p0 = pnand %p4380_p9, %p4683_p3 }
 0x68a   : > { %p4386_p8 = por %p4385_p4, %p4384_p6 }
 0x68b   : > { %p4382_p11 = pneg %p4381_p0 }
 0x68c   : > { %p4388_p5 = por %p4387_p10, %p4386_p8 }
 0x68e   : > { %p4389_p7 = pnand %p4388_p5, %p4382_p11 }
 0x690   : > { %4392 = shalt.err (!%p4389_p7)
}
 0x691   : > { %s4459_s22 = smov 128   ;;  %s4460_s20 = smov 8  }
 0x692   : > { %3752 = dma.vmem_to_hbm [thread:$0]  (%p4683_p3), %s4857_s25, 256, %s4862_s15, %s3129_s17, %s4459_s22, %s4459_s22, %s4460_s20  }
 0x693 PF: > { %s4943_s19 = sld [smem:[#allocation16_spill]]  ;;  %s4944_s13 = sld [smem:[#allocation17_spill]] }
 0x694   : > { %p4946_p1 = scmp.ge.s32.totalorder %s4439_s12, 2 }
 0x699   : > { %s3157_s27 = sand.u32 1, %s4943_s19   ;;  %p4945_p12 = scmp.ne.s32.totalorder %s4944_s13, 0 }
 0x69a   : > { %s3158_s28 = scalar_lea.sflag [#allocation4], %s3157_s27 }
 0x69b   : > { %p3772_p2 = pnand %p4946_p1, %p4945_p12 }
 0x69d   : > { %4422 = dma.done.wait (!%p3772_p2), %s3158_s28, 256  }
 0x69e   : > { %4424 = vsyncadd (!%p3772_p2), %s3158_s28, 4294967040  ;;  %s4947_s1 = smov %s4670_s30  ;;  %p24_p13 = scmp.ge.s32.totalorder %s4670_s30, 4  }
 0x69f   : > { %s4948_s30 = smov %s4431_s10  ;;  %s4949_s10 = smov %s4435_s11 }
 0x6a0   : > { %s4950_s11 = smov %s4679_s26  ;;  %s4951_s12 = smov %s4947_s1 }
 0x6a1   :  { %26 = sbr.rel (!%p24_p13) target bundleno = 9 (0x9), region = 117 }
 0x6a8   :  { %3163 = vsyncpa [#allocation3], 1 }
 0x6a9   :  { %3165 = vsyncpa [#allocation3 + $0x1], 1 }
 0x6aa   :  { %3166 = vsyncpa [#allocation6], 1 }
 0x6ab   :  { %3167 = vsyncpa [#allocation9], 1 }
 0x6ac   :  { %3168 = vsyncpa [#allocation4], 1 }
 0x6ad   :  { %3170 = vsyncpa [#allocation4 + $0x1], 1 }

</bundles_post_ra>
